<compile_context>
chip_gen: v6e
topology: v6e:2x2x1
jax: 0.10.0
libtpu: 0.0.40
codegen_flags: <defaults>
</compile_context>

<pallas_src>
import jax
import jax.numpy as jnp
import numpy as np
from jax import lax
from jax.experimental import pallas as pl
from jax.experimental.pallas import tpu as pltpu


def _contract(mat, x, use_mxu):
    """result[k, b] = sum_j mat[k, j] * x[j, b].

    MXU matmul for large tag counts; for tiny T the VPU broadcast + sublane
    reduce is cheaper than padding an 8-wide contraction up to the MXU width.
    """
    if use_mxu:
        return jnp.dot(mat, x, preferred_element_type=jnp.float32,
                       precision=lax.Precision.HIGHEST)
    return jnp.sum(mat[:, :, None] * x[None, :, :], axis=1)


def crf_kernel(em_ref, tags_ref, mask_ref, start_ref, end_ref, transT_ref, llh_ref):
    # em_ref:     (S, T, Bb) f32   -- batch on the 128-wide lane axis
    # tags_ref:   (S, Bb)     i32
    # mask_ref:   (S, Bb)     f32 (0/1); mask[0] == 1 enforced by the module
    # start_ref:  (T, 1) f32, end_ref: (T, 1) f32
    # transT_ref: (T, T) f32 with transT[k, j] = transitions[j, k]
    # llh_ref:    (1, Bb) f32
    S, T, Bb = em_ref.shape
    use_mxu = T >= 64  # static choice at trace time

    trans_T = transT_ref[...]
    start_c = start_ref[...]
    end_c = end_ref[...]

    # Precompute exp(trans) once, column-max shifted for numerical safety.
    tmax = jnp.max(trans_T, axis=1, keepdims=True)            # (T, 1): max_j trans[j, k]
    exp_transT = jnp.exp(trans_T - tmax)                      # (T, T)

    tag_iota = lax.broadcasted_iota(jnp.int32, (T, Bb), 0)    # hoisted (built once)

    # ---- t = 0 (mask[0] == 1 by the module's contract) ----
    em0 = em_ref[0]                                           # (T, Bb)
    oh0 = (tags_ref[pl.ds(0, 1), :] == tag_iota).astype(jnp.float32)

    num = (jnp.sum(start_c * oh0, axis=0, keepdims=True)
           + jnp.sum(oh0 * em0, axis=0, keepdims=True))       # (1, Bb)
    den = start_c + em0                                       # (T, Bb)

    def body(i, carry):
        num, den, oh_prev, last_oh = carry
        em_i = em_ref[i]                                      # (T, Bb)
        mask_i = mask_ref[pl.ds(i, 1), :]                     # (1, Bb)
        oh_cur = (tags_ref[pl.ds(i, 1), :] == tag_iota).astype(jnp.float32)

        # -------- numerator: one-hot gathers (exact) --------
        prev_rows = _contract(trans_T, oh_prev, use_mxu)      # (T, Bb): trans[tag_prev, k]
        trans_sel = jnp.sum(oh_cur * prev_rows, axis=0, keepdims=True)   # (1, Bb)
        em_sel = jnp.sum(oh_cur * em_i, axis=0, keepdims=True)           # (1, Bb)
        num = num + (trans_sel + em_sel) * mask_i

        # -------- denominator: logsumexp recursion vs. precomputed exp(trans) --------
        m = jnp.max(den, axis=0, keepdims=True)               # (1, Bb)
        p = jnp.exp(den - m)                                  # (T, Bb) -- B*T exps/step
        s = _contract(exp_transT, p, use_mxu)                 # (T, Bb)
        nxt = em_i + m + tmax + jnp.log(s)

        keep = mask_i > 0.5
        den = jnp.where(keep, nxt, den)
        last_oh = jnp.where(keep, oh_cur, last_oh)            # one-hot of last valid tag
        return num, den, oh_cur, last_oh

    num, den, _, last_oh = lax.fori_loop(
        1, S, body, (num, den, oh0, oh0),
        unroll=True if S <= 16 else 4)

    # end_transitions[last_tag]; exact for contiguous-prefix masks (standard CRF usage).
    num = num + jnp.sum(end_c * last_oh, axis=0, keepdims=True)

    fin = den + end_c                                         # (T, Bb)
    fmax = jnp.max(fin, axis=0, keepdims=True)
    denom = fmax + jnp.log(jnp.sum(jnp.exp(fin - fmax), axis=0, keepdims=True))

    llh_ref[...] = num - denom                                # (1, Bb)


def crf_forward(emissions, tags, mask, start_transitions, end_transitions,
                transitions, reduction="sum", batch_block=256):
    """emissions: (S,B,T) f32, tags: (S,B) int, mask: (S,B) {0,1}; batch_first=False."""
    S, B, T = emissions.shape

    # Wrapper-side layout plumbing: batch goes on the lane axis.
    em = jnp.transpose(emissions.astype(jnp.float32), (0, 2, 1))   # (S, T, B)
    tags_i = tags.astype(jnp.int32)
    mask_f = mask.astype(jnp.float32)
    start_c = start_transitions.reshape(T, 1).astype(jnp.float32)
    end_c = end_transitions.reshape(T, 1).astype(jnp.float32)
    trans_T = jnp.transpose(transitions.astype(jnp.float32))       # (T, T)

    # Batch tiling: one block if small, else 128-multiple lane tiles (padded).
    # batch_block=256 keeps the double-buffered working set comfortably inside
    # the default scoped VMEM on v5e/v6e/v7x for typical (S, T); shrink for very
    # long sequences or raise vmem_limit_bytes after re-deriving the budget.
    if B <= batch_block:
        Bb, Bp = B, B
    else:
        Bb = batch_block                                            # multiple of 128
        Bp = pl.cdiv(B, Bb) * Bb
        pad = Bp - B
        em = jnp.pad(em, ((0, 0), (0, 0), (0, pad)))
        tags_i = jnp.pad(tags_i, ((0, 0), (0, pad)))
        mask_f = jnp.pad(mask_f, ((0, 0), (0, pad)))                # padded lanes sliced off

    llh = pl.pallas_call(
        crf_kernel,
        out_shape=jax.ShapeDtypeStruct((1, Bp), jnp.float32),
        grid=(Bp // Bb,),
        in_specs=[
            pl.BlockSpec((S, T, Bb), lambda b: (0, 0, b)),
            pl.BlockSpec((S, Bb), lambda b: (0, b)),
            pl.BlockSpec((S, Bb), lambda b: (0, b)),
            pl.BlockSpec((T, 1), lambda b: (0, 0)),
            pl.BlockSpec((T, 1), lambda b: (0, 0)),
            pl.BlockSpec((T, T), lambda b: (0, 0)),
        ],
        out_specs=pl.BlockSpec((1, Bb), lambda b: (0, b)),
        compiler_params=pltpu.CompilerParams(
            dimension_semantics=("parallel",)),
    )(em, tags_i, mask_f, start_c, end_c, trans_T)

    llh = llh[0, :B]                                                # (B,)
    if reduction == "none":
        return llh
    if reduction == "sum":
        return jnp.sum(llh)
    if reduction == "mean":
        return jnp.mean(llh)
    assert reduction == "token_mean"
    return jnp.sum(llh) / jnp.sum(mask.astype(jnp.float32))


# ---------------- pure-JAX reference (mirrors the PyTorch code) ----------------
def crf_reference(emissions, tags, mask, start, end, trans, reduction="sum"):
    S, B, T = emissions.shape
    maskf = mask.astype(jnp.float32)
    # numerator
    score = start[tags[0]] + emissions[0, jnp.arange(B), tags[0]]
    for i in range(1, S):
        score = score + trans[tags[i - 1], tags[i]] * maskf[i]
        score = score + emissions[i, jnp.arange(B), tags[i]] * maskf[i]
    seq_ends = jnp.sum(mask.astype(jnp.int32), axis=0) - 1
    last_tags = tags[seq_ends, jnp.arange(B)]
    numerator = score + end[last_tags]
    # denominator
    sc = start + emissions[0]
    for i in range(1, S):
        nxt = jax.scipy.special.logsumexp(
            sc[:, :, None] + trans[None] + emissions[i][:, None, :], axis=1)
        sc = jnp.where(maskf[i][:, None] > 0.5, nxt, sc)
    denominator = jax.scipy.special.logsumexp(sc + end, axis=1)
    llh = numerator - denominator
    if reduction == "sum":
        return jnp.sum(llh)
    return llh


if __name__ == "__main__":
    S, B, T = 6, 4, 8  # seq_len, batch, num_tags

    key = jax.random.PRNGKey(0)
    k_em, k_tag, k_s, k_e, k_t = jax.random.split(key, 5)

    # deterministic parameter init: uniform(-0.1, 0.1) like reset_parameters()
    start_transitions = jax.random.uniform(k_s, (T,), jnp.float32, -0.1, 0.1)
    end_transitions = jax.random.uniform(k_e, (T,), jnp.float32, -0.1, 0.1)
    transitions = jax.random.uniform(k_t, (T, T), jnp.float32, -0.1, 0.1)

    emissions = jax.random.normal(k_em, (S, B, T), jnp.float32)
    tags = jax.random.randint(k_tag, (S, B), 0, T, jnp.int32)
    # variable-length mask: first timestep all-on (required by the module)
    lengths = jnp.array([6, 4, 5, 3], dtype=jnp.int32)
    mask = (jnp.arange(S)[:, None] < lengths[None, :]).astype(jnp.int32)

    out = crf_forward(emissions, tags, mask, start_transitions,
                      end_transitions, transitions, reduction="sum")
    out = jax.block_until_ready(out)

    ref = crf_reference(emissions, tags, mask, start_transitions,
                        end_transitions, transitions, reduction="sum")
    np.testing.assert_allclose(np.asarray(out), np.asarray(ref), rtol=1e-5, atol=1e-5)

    print("KERNEL_OK")
</pallas_src>

<mosaic_0001>
module attributes {stable_mosaic.version = 11 : i64} {
  func.func @crf_kernel(%arg0: i32, %arg1: memref<6x8x4xf32, #tpu.memory_space<vmem>>, %arg2: memref<6x4xi32, #tpu.memory_space<vmem>>, %arg3: memref<6x4xf32, #tpu.memory_space<vmem>>, %arg4: memref<8x1xf32, #tpu.memory_space<vmem>>, %arg5: memref<8x1xf32, #tpu.memory_space<vmem>>, %arg6: memref<8x8xf32, #tpu.memory_space<vmem>>, %arg7: memref<1x4xf32, #tpu.memory_space<vmem>>) attributes {dimension_semantics = [#tpu.dimension_semantics<parallel>], iteration_bounds = array<i64: 1>, scalar_prefetch = 0 : i64, scratch_operands = 0 : i64, tpu.core_type = #tpu.core_type<tc>, window_params = [{transform_indices = @transform_0, window_bounds = array<i64: 6, 8, 4>}, {transform_indices = @transform_1, window_bounds = array<i64: 6, 4>}, {transform_indices = @transform_2, window_bounds = array<i64: 6, 4>}, {pipeline_mode = #tpu.pipeline_mode<synchronous>, transform_indices = @transform_3, window_bounds = array<i64: 8, 1>}, {pipeline_mode = #tpu.pipeline_mode<synchronous>, transform_indices = @transform_4, window_bounds = array<i64: 8, 1>}, {pipeline_mode = #tpu.pipeline_mode<synchronous>, transform_indices = @transform_5, window_bounds = array<i64: 8, 8>}, {transform_indices = @transform_6, window_bounds = array<i64: 1, 4>}]} {
    %c0 = arith.constant 0 : index
    %c0_0 = arith.constant 0 : index
    %0 = vector.load %arg6[%c0, %c0_0] : memref<8x8xf32, #tpu.memory_space<vmem>>, vector<8x8xf32>
    %c0_1 = arith.constant 0 : index
    %c0_2 = arith.constant 0 : index
    %1 = vector.load %arg4[%c0_1, %c0_2] : memref<8x1xf32, #tpu.memory_space<vmem>>, vector<8x1xf32>
    %c0_3 = arith.constant 0 : index
    %c0_4 = arith.constant 0 : index
    %2 = vector.load %arg5[%c0_3, %c0_4] : memref<8x1xf32, #tpu.memory_space<vmem>>, vector<8x1xf32>
    %cst = arith.constant dense<0xFF800000> : vector<8xf32>
    %3 = vector.multi_reduction <maximumf>, %0, %cst [1] : vector<8x8xf32> to vector<8xf32>
    %4 = vector.shape_cast %3 : vector<8xf32> to vector<8x1xf32>
    %5 = vector.broadcast %4 : vector<8x1xf32> to vector<8x8xf32>
    %6 = arith.subf %0, %5 : vector<8x8xf32>
    %7 = math.exp %6 : vector<8x8xf32>
    %8 = tpu.iota {dimensions = array<i32: 0>} : vector<8x4xi32>
    %c0_5 = arith.constant 0 : index
    %c0_6 = arith.constant 0 : index
    %c0_7 = arith.constant 0 : index
    %9 = vector.load %arg1[%c0_5, %c0_6, %c0_7] : memref<6x8x4xf32, #tpu.memory_space<vmem>>, vector<1x8x4xf32>
    %10 = vector.shape_cast %9 : vector<1x8x4xf32> to vector<8x4xf32>
    %c0_8 = arith.constant 0 : index
    %c0_9 = arith.constant 0 : index
    %11 = vector.load %arg2[%c0_8, %c0_9] : memref<6x4xi32, #tpu.memory_space<vmem>>, vector<1x4xi32>
    %12 = vector.broadcast %11 : vector<1x4xi32> to vector<8x4xi32>
    %13 = arith.cmpi eq, %12, %8 : vector<8x4xi32>
    %14 = arith.extui %13 : vector<8x4xi1> to vector<8x4xi32>
    %15 = arith.sitofp %14 : vector<8x4xi32> to vector<8x4xf32>
    %16 = vector.broadcast %1 : vector<8x1xf32> to vector<8x4xf32>
    %17 = arith.mulf %16, %15 : vector<8x4xf32>
    %cst_10 = arith.constant dense<0.000000e+00> : vector<4xf32>
    %18 = vector.multi_reduction <add>, %17, %cst_10 [0] : vector<8x4xf32> to vector<4xf32>
    %19 = vector.shape_cast %18 : vector<4xf32> to vector<1x4xf32>
    %20 = arith.mulf %15, %10 : vector<8x4xf32>
    %cst_11 = arith.constant dense<0.000000e+00> : vector<4xf32>
    %21 = vector.multi_reduction <add>, %20, %cst_11 [0] : vector<8x4xf32> to vector<4xf32>
    %22 = vector.shape_cast %21 : vector<4xf32> to vector<1x4xf32>
    %23 = arith.addf %19, %22 : vector<1x4xf32>
    %24 = vector.broadcast %1 : vector<8x1xf32> to vector<8x4xf32>
    %25 = arith.addf %24, %10 : vector<8x4xf32>
    %c1_i32 = arith.constant 1 : i32
    %26 = arith.index_cast %c1_i32 : i32 to index
    %c0_12 = arith.constant 0 : index
    %c0_13 = arith.constant 0 : index
    %27 = vector.load %arg1[%26, %c0_12, %c0_13] : memref<6x8x4xf32, #tpu.memory_space<vmem>>, vector<1x8x4xf32>
    %28 = vector.shape_cast %27 : vector<1x8x4xf32> to vector<8x4xf32>
    %29 = arith.index_cast %c1_i32 : i32 to index
    %c0_14 = arith.constant 0 : index
    %30 = vector.load %arg3[%29, %c0_14] : memref<6x4xf32, #tpu.memory_space<vmem>>, vector<1x4xf32>
    %31 = arith.index_cast %c1_i32 : i32 to index
    %c0_15 = arith.constant 0 : index
    %32 = vector.load %arg2[%31, %c0_15] : memref<6x4xi32, #tpu.memory_space<vmem>>, vector<1x4xi32>
    %33 = vector.broadcast %32 : vector<1x4xi32> to vector<8x4xi32>
    %34 = arith.cmpi eq, %33, %8 : vector<8x4xi32>
    %35 = arith.extui %34 : vector<8x4xi1> to vector<8x4xi32>
    %36 = arith.sitofp %35 : vector<8x4xi32> to vector<8x4xf32>
    %37 = vector.shape_cast %0 : vector<8x8xf32> to vector<8x8x1xf32>
    %38 = vector.shape_cast %15 : vector<8x4xf32> to vector<1x8x4xf32>
    %39 = vector.broadcast %37 : vector<8x8x1xf32> to vector<8x8x4xf32>
    %40 = vector.broadcast %38 : vector<1x8x4xf32> to vector<8x8x4xf32>
    %41 = arith.mulf %39, %40 : vector<8x8x4xf32>
    %cst_16 = arith.constant dense<0.000000e+00> : vector<8x4xf32>
    %42 = vector.multi_reduction <add>, %41, %cst_16 [1] : vector<8x8x4xf32> to vector<8x4xf32>
    %43 = arith.mulf %36, %42 : vector<8x4xf32>
    %cst_17 = arith.constant dense<0.000000e+00> : vector<4xf32>
    %44 = vector.multi_reduction <add>, %43, %cst_17 [0] : vector<8x4xf32> to vector<4xf32>
    %45 = vector.shape_cast %44 : vector<4xf32> to vector<1x4xf32>
    %46 = arith.mulf %36, %28 : vector<8x4xf32>
    %cst_18 = arith.constant dense<0.000000e+00> : vector<4xf32>
    %47 = vector.multi_reduction <add>, %46, %cst_18 [0] : vector<8x4xf32> to vector<4xf32>
    %48 = vector.shape_cast %47 : vector<4xf32> to vector<1x4xf32>
    %49 = arith.addf %45, %48 : vector<1x4xf32>
    %50 = arith.mulf %49, %30 : vector<1x4xf32>
    %51 = arith.addf %23, %50 : vector<1x4xf32>
    %cst_19 = arith.constant dense<0xFF800000> : vector<4xf32>
    %52 = vector.multi_reduction <maximumf>, %25, %cst_19 [0] : vector<8x4xf32> to vector<4xf32>
    %53 = vector.shape_cast %52 : vector<4xf32> to vector<1x4xf32>
    %54 = vector.broadcast %53 : vector<1x4xf32> to vector<8x4xf32>
    %55 = arith.subf %25, %54 : vector<8x4xf32>
    %56 = math.exp %55 : vector<8x4xf32>
    %57 = vector.shape_cast %7 : vector<8x8xf32> to vector<8x8x1xf32>
    %58 = vector.shape_cast %56 : vector<8x4xf32> to vector<1x8x4xf32>
    %59 = vector.broadcast %57 : vector<8x8x1xf32> to vector<8x8x4xf32>
    %60 = vector.broadcast %58 : vector<1x8x4xf32> to vector<8x8x4xf32>
    %61 = arith.mulf %59, %60 : vector<8x8x4xf32>
    %cst_20 = arith.constant dense<0.000000e+00> : vector<8x4xf32>
    %62 = vector.multi_reduction <add>, %61, %cst_20 [1] : vector<8x8x4xf32> to vector<8x4xf32>
    %63 = vector.broadcast %53 : vector<1x4xf32> to vector<8x4xf32>
    %64 = arith.addf %28, %63 : vector<8x4xf32>
    %65 = vector.broadcast %4 : vector<8x1xf32> to vector<8x4xf32>
    %66 = arith.addf %64, %65 : vector<8x4xf32>
    %67 = math.log %62 : vector<8x4xf32>
    %68 = arith.addf %66, %67 : vector<8x4xf32>
    %cst_21 = arith.constant 5.000000e-01 : f32
    %69 = vector.broadcast %cst_21 : f32 to vector<1x4xf32>
    %70 = arith.cmpf ogt, %30, %69 : vector<1x4xf32>
    %71 = vector.shape_cast %70 : vector<1x4xi1> to vector<1x4xi1>
    %72 = vector.broadcast %71 : vector<1x4xi1> to vector<8x4xi1>
    %73 = arith.select %72, %68, %25 : vector<8x4xi1>, vector<8x4xf32>
    %74 = vector.shape_cast %70 : vector<1x4xi1> to vector<1x4xi1>
    %75 = vector.broadcast %74 : vector<1x4xi1> to vector<8x4xi1>
    %76 = arith.select %75, %36, %15 : vector<8x4xi1>, vector<8x4xf32>
    %c2_i32 = arith.constant 2 : i32
    %77 = arith.index_cast %c2_i32 : i32 to index
    %c0_22 = arith.constant 0 : index
    %c0_23 = arith.constant 0 : index
    %78 = vector.load %arg1[%77, %c0_22, %c0_23] : memref<6x8x4xf32, #tpu.memory_space<vmem>>, vector<1x8x4xf32>
    %79 = vector.shape_cast %78 : vector<1x8x4xf32> to vector<8x4xf32>
    %80 = arith.index_cast %c2_i32 : i32 to index
    %c0_24 = arith.constant 0 : index
    %81 = vector.load %arg3[%80, %c0_24] : memref<6x4xf32, #tpu.memory_space<vmem>>, vector<1x4xf32>
    %82 = arith.index_cast %c2_i32 : i32 to index
    %c0_25 = arith.constant 0 : index
    %83 = vector.load %arg2[%82, %c0_25] : memref<6x4xi32, #tpu.memory_space<vmem>>, vector<1x4xi32>
    %84 = vector.broadcast %83 : vector<1x4xi32> to vector<8x4xi32>
    %85 = arith.cmpi eq, %84, %8 : vector<8x4xi32>
    %86 = arith.extui %85 : vector<8x4xi1> to vector<8x4xi32>
    %87 = arith.sitofp %86 : vector<8x4xi32> to vector<8x4xf32>
    %88 = vector.shape_cast %0 : vector<8x8xf32> to vector<8x8x1xf32>
    %89 = vector.shape_cast %36 : vector<8x4xf32> to vector<1x8x4xf32>
    %90 = vector.broadcast %88 : vector<8x8x1xf32> to vector<8x8x4xf32>
    %91 = vector.broadcast %89 : vector<1x8x4xf32> to vector<8x8x4xf32>
    %92 = arith.mulf %90, %91 : vector<8x8x4xf32>
    %cst_26 = arith.constant dense<0.000000e+00> : vector<8x4xf32>
    %93 = vector.multi_reduction <add>, %92, %cst_26 [1] : vector<8x8x4xf32> to vector<8x4xf32>
    %94 = arith.mulf %87, %93 : vector<8x4xf32>
    %cst_27 = arith.constant dense<0.000000e+00> : vector<4xf32>
    %95 = vector.multi_reduction <add>, %94, %cst_27 [0] : vector<8x4xf32> to vector<4xf32>
    %96 = vector.shape_cast %95 : vector<4xf32> to vector<1x4xf32>
    %97 = arith.mulf %87, %79 : vector<8x4xf32>
    %cst_28 = arith.constant dense<0.000000e+00> : vector<4xf32>
    %98 = vector.multi_reduction <add>, %97, %cst_28 [0] : vector<8x4xf32> to vector<4xf32>
    %99 = vector.shape_cast %98 : vector<4xf32> to vector<1x4xf32>
    %100 = arith.addf %96, %99 : vector<1x4xf32>
    %101 = arith.mulf %100, %81 : vector<1x4xf32>
    %102 = arith.addf %51, %101 : vector<1x4xf32>
    %cst_29 = arith.constant dense<0xFF800000> : vector<4xf32>
    %103 = vector.multi_reduction <maximumf>, %73, %cst_29 [0] : vector<8x4xf32> to vector<4xf32>
    %104 = vector.shape_cast %103 : vector<4xf32> to vector<1x4xf32>
    %105 = vector.broadcast %104 : vector<1x4xf32> to vector<8x4xf32>
    %106 = arith.subf %73, %105 : vector<8x4xf32>
    %107 = math.exp %106 : vector<8x4xf32>
    %108 = vector.shape_cast %7 : vector<8x8xf32> to vector<8x8x1xf32>
    %109 = vector.shape_cast %107 : vector<8x4xf32> to vector<1x8x4xf32>
    %110 = vector.broadcast %108 : vector<8x8x1xf32> to vector<8x8x4xf32>
    %111 = vector.broadcast %109 : vector<1x8x4xf32> to vector<8x8x4xf32>
    %112 = arith.mulf %110, %111 : vector<8x8x4xf32>
    %cst_30 = arith.constant dense<0.000000e+00> : vector<8x4xf32>
    %113 = vector.multi_reduction <add>, %112, %cst_30 [1] : vector<8x8x4xf32> to vector<8x4xf32>
    %114 = vector.broadcast %104 : vector<1x4xf32> to vector<8x4xf32>
    %115 = arith.addf %79, %114 : vector<8x4xf32>
    %116 = vector.broadcast %4 : vector<8x1xf32> to vector<8x4xf32>
    %117 = arith.addf %115, %116 : vector<8x4xf32>
    %118 = math.log %113 : vector<8x4xf32>
    %119 = arith.addf %117, %118 : vector<8x4xf32>
    %cst_31 = arith.constant 5.000000e-01 : f32
    %120 = vector.broadcast %cst_31 : f32 to vector<1x4xf32>
    %121 = arith.cmpf ogt, %81, %120 : vector<1x4xf32>
    %122 = vector.shape_cast %121 : vector<1x4xi1> to vector<1x4xi1>
    %123 = vector.broadcast %122 : vector<1x4xi1> to vector<8x4xi1>
    %124 = arith.select %123, %119, %73 : vector<8x4xi1>, vector<8x4xf32>
    %125 = vector.shape_cast %121 : vector<1x4xi1> to vector<1x4xi1>
    %126 = vector.broadcast %125 : vector<1x4xi1> to vector<8x4xi1>
    %127 = arith.select %126, %87, %76 : vector<8x4xi1>, vector<8x4xf32>
    %c3_i32 = arith.constant 3 : i32
    %128 = arith.index_cast %c3_i32 : i32 to index
    %c0_32 = arith.constant 0 : index
    %c0_33 = arith.constant 0 : index
    %129 = vector.load %arg1[%128, %c0_32, %c0_33] : memref<6x8x4xf32, #tpu.memory_space<vmem>>, vector<1x8x4xf32>
    %130 = vector.shape_cast %129 : vector<1x8x4xf32> to vector<8x4xf32>
    %131 = arith.index_cast %c3_i32 : i32 to index
    %c0_34 = arith.constant 0 : index
    %132 = vector.load %arg3[%131, %c0_34] : memref<6x4xf32, #tpu.memory_space<vmem>>, vector<1x4xf32>
    %133 = arith.index_cast %c3_i32 : i32 to index
    %c0_35 = arith.constant 0 : index
    %134 = vector.load %arg2[%133, %c0_35] : memref<6x4xi32, #tpu.memory_space<vmem>>, vector<1x4xi32>
    %135 = vector.broadcast %134 : vector<1x4xi32> to vector<8x4xi32>
    %136 = arith.cmpi eq, %135, %8 : vector<8x4xi32>
    %137 = arith.extui %136 : vector<8x4xi1> to vector<8x4xi32>
    %138 = arith.sitofp %137 : vector<8x4xi32> to vector<8x4xf32>
    %139 = vector.shape_cast %0 : vector<8x8xf32> to vector<8x8x1xf32>
    %140 = vector.shape_cast %87 : vector<8x4xf32> to vector<1x8x4xf32>
    %141 = vector.broadcast %139 : vector<8x8x1xf32> to vector<8x8x4xf32>
    %142 = vector.broadcast %140 : vector<1x8x4xf32> to vector<8x8x4xf32>
    %143 = arith.mulf %141, %142 : vector<8x8x4xf32>
    %cst_36 = arith.constant dense<0.000000e+00> : vector<8x4xf32>
    %144 = vector.multi_reduction <add>, %143, %cst_36 [1] : vector<8x8x4xf32> to vector<8x4xf32>
    %145 = arith.mulf %138, %144 : vector<8x4xf32>
    %cst_37 = arith.constant dense<0.000000e+00> : vector<4xf32>
    %146 = vector.multi_reduction <add>, %145, %cst_37 [0] : vector<8x4xf32> to vector<4xf32>
    %147 = vector.shape_cast %146 : vector<4xf32> to vector<1x4xf32>
    %148 = arith.mulf %138, %130 : vector<8x4xf32>
    %cst_38 = arith.constant dense<0.000000e+00> : vector<4xf32>
    %149 = vector.multi_reduction <add>, %148, %cst_38 [0] : vector<8x4xf32> to vector<4xf32>
    %150 = vector.shape_cast %149 : vector<4xf32> to vector<1x4xf32>
    %151 = arith.addf %147, %150 : vector<1x4xf32>
    %152 = arith.mulf %151, %132 : vector<1x4xf32>
    %153 = arith.addf %102, %152 : vector<1x4xf32>
    %cst_39 = arith.constant dense<0xFF800000> : vector<4xf32>
    %154 = vector.multi_reduction <maximumf>, %124, %cst_39 [0] : vector<8x4xf32> to vector<4xf32>
    %155 = vector.shape_cast %154 : vector<4xf32> to vector<1x4xf32>
    %156 = vector.broadcast %155 : vector<1x4xf32> to vector<8x4xf32>
    %157 = arith.subf %124, %156 : vector<8x4xf32>
    %158 = math.exp %157 : vector<8x4xf32>
    %159 = vector.shape_cast %7 : vector<8x8xf32> to vector<8x8x1xf32>
    %160 = vector.shape_cast %158 : vector<8x4xf32> to vector<1x8x4xf32>
    %161 = vector.broadcast %159 : vector<8x8x1xf32> to vector<8x8x4xf32>
    %162 = vector.broadcast %160 : vector<1x8x4xf32> to vector<8x8x4xf32>
    %163 = arith.mulf %161, %162 : vector<8x8x4xf32>
    %cst_40 = arith.constant dense<0.000000e+00> : vector<8x4xf32>
    %164 = vector.multi_reduction <add>, %163, %cst_40 [1] : vector<8x8x4xf32> to vector<8x4xf32>
    %165 = vector.broadcast %155 : vector<1x4xf32> to vector<8x4xf32>
    %166 = arith.addf %130, %165 : vector<8x4xf32>
    %167 = vector.broadcast %4 : vector<8x1xf32> to vector<8x4xf32>
    %168 = arith.addf %166, %167 : vector<8x4xf32>
    %169 = math.log %164 : vector<8x4xf32>
    %170 = arith.addf %168, %169 : vector<8x4xf32>
    %cst_41 = arith.constant 5.000000e-01 : f32
    %171 = vector.broadcast %cst_41 : f32 to vector<1x4xf32>
    %172 = arith.cmpf ogt, %132, %171 : vector<1x4xf32>
    %173 = vector.shape_cast %172 : vector<1x4xi1> to vector<1x4xi1>
    %174 = vector.broadcast %173 : vector<1x4xi1> to vector<8x4xi1>
    %175 = arith.select %174, %170, %124 : vector<8x4xi1>, vector<8x4xf32>
    %176 = vector.shape_cast %172 : vector<1x4xi1> to vector<1x4xi1>
    %177 = vector.broadcast %176 : vector<1x4xi1> to vector<8x4xi1>
    %178 = arith.select %177, %138, %127 : vector<8x4xi1>, vector<8x4xf32>
    %c4_i32 = arith.constant 4 : i32
    %179 = arith.index_cast %c4_i32 : i32 to index
    %c0_42 = arith.constant 0 : index
    %c0_43 = arith.constant 0 : index
    %180 = vector.load %arg1[%179, %c0_42, %c0_43] : memref<6x8x4xf32, #tpu.memory_space<vmem>>, vector<1x8x4xf32>
    %181 = vector.shape_cast %180 : vector<1x8x4xf32> to vector<8x4xf32>
    %182 = arith.index_cast %c4_i32 : i32 to index
    %c0_44 = arith.constant 0 : index
    %183 = vector.load %arg3[%182, %c0_44] : memref<6x4xf32, #tpu.memory_space<vmem>>, vector<1x4xf32>
    %184 = arith.index_cast %c4_i32 : i32 to index
    %c0_45 = arith.constant 0 : index
    %185 = vector.load %arg2[%184, %c0_45] : memref<6x4xi32, #tpu.memory_space<vmem>>, vector<1x4xi32>
    %186 = vector.broadcast %185 : vector<1x4xi32> to vector<8x4xi32>
    %187 = arith.cmpi eq, %186, %8 : vector<8x4xi32>
    %188 = arith.extui %187 : vector<8x4xi1> to vector<8x4xi32>
    %189 = arith.sitofp %188 : vector<8x4xi32> to vector<8x4xf32>
    %190 = vector.shape_cast %0 : vector<8x8xf32> to vector<8x8x1xf32>
    %191 = vector.shape_cast %138 : vector<8x4xf32> to vector<1x8x4xf32>
    %192 = vector.broadcast %190 : vector<8x8x1xf32> to vector<8x8x4xf32>
    %193 = vector.broadcast %191 : vector<1x8x4xf32> to vector<8x8x4xf32>
    %194 = arith.mulf %192, %193 : vector<8x8x4xf32>
    %cst_46 = arith.constant dense<0.000000e+00> : vector<8x4xf32>
    %195 = vector.multi_reduction <add>, %194, %cst_46 [1] : vector<8x8x4xf32> to vector<8x4xf32>
    %196 = arith.mulf %189, %195 : vector<8x4xf32>
    %cst_47 = arith.constant dense<0.000000e+00> : vector<4xf32>
    %197 = vector.multi_reduction <add>, %196, %cst_47 [0] : vector<8x4xf32> to vector<4xf32>
    %198 = vector.shape_cast %197 : vector<4xf32> to vector<1x4xf32>
    %199 = arith.mulf %189, %181 : vector<8x4xf32>
    %cst_48 = arith.constant dense<0.000000e+00> : vector<4xf32>
    %200 = vector.multi_reduction <add>, %199, %cst_48 [0] : vector<8x4xf32> to vector<4xf32>
    %201 = vector.shape_cast %200 : vector<4xf32> to vector<1x4xf32>
    %202 = arith.addf %198, %201 : vector<1x4xf32>
    %203 = arith.mulf %202, %183 : vector<1x4xf32>
    %204 = arith.addf %153, %203 : vector<1x4xf32>
    %cst_49 = arith.constant dense<0xFF800000> : vector<4xf32>
    %205 = vector.multi_reduction <maximumf>, %175, %cst_49 [0] : vector<8x4xf32> to vector<4xf32>
    %206 = vector.shape_cast %205 : vector<4xf32> to vector<1x4xf32>
    %207 = vector.broadcast %206 : vector<1x4xf32> to vector<8x4xf32>
    %208 = arith.subf %175, %207 : vector<8x4xf32>
    %209 = math.exp %208 : vector<8x4xf32>
    %210 = vector.shape_cast %7 : vector<8x8xf32> to vector<8x8x1xf32>
    %211 = vector.shape_cast %209 : vector<8x4xf32> to vector<1x8x4xf32>
    %212 = vector.broadcast %210 : vector<8x8x1xf32> to vector<8x8x4xf32>
    %213 = vector.broadcast %211 : vector<1x8x4xf32> to vector<8x8x4xf32>
    %214 = arith.mulf %212, %213 : vector<8x8x4xf32>
    %cst_50 = arith.constant dense<0.000000e+00> : vector<8x4xf32>
    %215 = vector.multi_reduction <add>, %214, %cst_50 [1] : vector<8x8x4xf32> to vector<8x4xf32>
    %216 = vector.broadcast %206 : vector<1x4xf32> to vector<8x4xf32>
    %217 = arith.addf %181, %216 : vector<8x4xf32>
    %218 = vector.broadcast %4 : vector<8x1xf32> to vector<8x4xf32>
    %219 = arith.addf %217, %218 : vector<8x4xf32>
    %220 = math.log %215 : vector<8x4xf32>
    %221 = arith.addf %219, %220 : vector<8x4xf32>
    %cst_51 = arith.constant 5.000000e-01 : f32
    %222 = vector.broadcast %cst_51 : f32 to vector<1x4xf32>
    %223 = arith.cmpf ogt, %183, %222 : vector<1x4xf32>
    %224 = vector.shape_cast %223 : vector<1x4xi1> to vector<1x4xi1>
    %225 = vector.broadcast %224 : vector<1x4xi1> to vector<8x4xi1>
    %226 = arith.select %225, %221, %175 : vector<8x4xi1>, vector<8x4xf32>
    %227 = vector.shape_cast %223 : vector<1x4xi1> to vector<1x4xi1>
    %228 = vector.broadcast %227 : vector<1x4xi1> to vector<8x4xi1>
    %229 = arith.select %228, %189, %178 : vector<8x4xi1>, vector<8x4xf32>
    %c5_i32 = arith.constant 5 : i32
    %230 = arith.index_cast %c5_i32 : i32 to index
    %c0_52 = arith.constant 0 : index
    %c0_53 = arith.constant 0 : index
    %231 = vector.load %arg1[%230, %c0_52, %c0_53] : memref<6x8x4xf32, #tpu.memory_space<vmem>>, vector<1x8x4xf32>
    %232 = vector.shape_cast %231 : vector<1x8x4xf32> to vector<8x4xf32>
    %233 = arith.index_cast %c5_i32 : i32 to index
    %c0_54 = arith.constant 0 : index
    %234 = vector.load %arg3[%233, %c0_54] : memref<6x4xf32, #tpu.memory_space<vmem>>, vector<1x4xf32>
    %235 = arith.index_cast %c5_i32 : i32 to index
    %c0_55 = arith.constant 0 : index
    %236 = vector.load %arg2[%235, %c0_55] : memref<6x4xi32, #tpu.memory_space<vmem>>, vector<1x4xi32>
    %237 = vector.broadcast %236 : vector<1x4xi32> to vector<8x4xi32>
    %238 = arith.cmpi eq, %237, %8 : vector<8x4xi32>
    %239 = arith.extui %238 : vector<8x4xi1> to vector<8x4xi32>
    %240 = arith.sitofp %239 : vector<8x4xi32> to vector<8x4xf32>
    %241 = vector.shape_cast %0 : vector<8x8xf32> to vector<8x8x1xf32>
    %242 = vector.shape_cast %189 : vector<8x4xf32> to vector<1x8x4xf32>
    %243 = vector.broadcast %241 : vector<8x8x1xf32> to vector<8x8x4xf32>
    %244 = vector.broadcast %242 : vector<1x8x4xf32> to vector<8x8x4xf32>
    %245 = arith.mulf %243, %244 : vector<8x8x4xf32>
    %cst_56 = arith.constant dense<0.000000e+00> : vector<8x4xf32>
    %246 = vector.multi_reduction <add>, %245, %cst_56 [1] : vector<8x8x4xf32> to vector<8x4xf32>
    %247 = arith.mulf %240, %246 : vector<8x4xf32>
    %cst_57 = arith.constant dense<0.000000e+00> : vector<4xf32>
    %248 = vector.multi_reduction <add>, %247, %cst_57 [0] : vector<8x4xf32> to vector<4xf32>
    %249 = vector.shape_cast %248 : vector<4xf32> to vector<1x4xf32>
    %250 = arith.mulf %240, %232 : vector<8x4xf32>
    %cst_58 = arith.constant dense<0.000000e+00> : vector<4xf32>
    %251 = vector.multi_reduction <add>, %250, %cst_58 [0] : vector<8x4xf32> to vector<4xf32>
    %252 = vector.shape_cast %251 : vector<4xf32> to vector<1x4xf32>
    %253 = arith.addf %249, %252 : vector<1x4xf32>
    %254 = arith.mulf %253, %234 : vector<1x4xf32>
    %255 = arith.addf %204, %254 : vector<1x4xf32>
    %cst_59 = arith.constant dense<0xFF800000> : vector<4xf32>
    %256 = vector.multi_reduction <maximumf>, %226, %cst_59 [0] : vector<8x4xf32> to vector<4xf32>
    %257 = vector.shape_cast %256 : vector<4xf32> to vector<1x4xf32>
    %258 = vector.broadcast %257 : vector<1x4xf32> to vector<8x4xf32>
    %259 = arith.subf %226, %258 : vector<8x4xf32>
    %260 = math.exp %259 : vector<8x4xf32>
    %261 = vector.shape_cast %7 : vector<8x8xf32> to vector<8x8x1xf32>
    %262 = vector.shape_cast %260 : vector<8x4xf32> to vector<1x8x4xf32>
    %263 = vector.broadcast %261 : vector<8x8x1xf32> to vector<8x8x4xf32>
    %264 = vector.broadcast %262 : vector<1x8x4xf32> to vector<8x8x4xf32>
    %265 = arith.mulf %263, %264 : vector<8x8x4xf32>
    %cst_60 = arith.constant dense<0.000000e+00> : vector<8x4xf32>
    %266 = vector.multi_reduction <add>, %265, %cst_60 [1] : vector<8x8x4xf32> to vector<8x4xf32>
    %267 = vector.broadcast %257 : vector<1x4xf32> to vector<8x4xf32>
    %268 = arith.addf %232, %267 : vector<8x4xf32>
    %269 = vector.broadcast %4 : vector<8x1xf32> to vector<8x4xf32>
    %270 = arith.addf %268, %269 : vector<8x4xf32>
    %271 = math.log %266 : vector<8x4xf32>
    %272 = arith.addf %270, %271 : vector<8x4xf32>
    %cst_61 = arith.constant 5.000000e-01 : f32
    %273 = vector.broadcast %cst_61 : f32 to vector<1x4xf32>
    %274 = arith.cmpf ogt, %234, %273 : vector<1x4xf32>
    %275 = vector.shape_cast %274 : vector<1x4xi1> to vector<1x4xi1>
    %276 = vector.broadcast %275 : vector<1x4xi1> to vector<8x4xi1>
    %277 = arith.select %276, %272, %226 : vector<8x4xi1>, vector<8x4xf32>
    %278 = vector.shape_cast %274 : vector<1x4xi1> to vector<1x4xi1>
    %279 = vector.broadcast %278 : vector<1x4xi1> to vector<8x4xi1>
    %280 = arith.select %279, %240, %229 : vector<8x4xi1>, vector<8x4xf32>
    %c5_i32_62 = arith.constant 5 : i32
    %281 = vector.broadcast %2 : vector<8x1xf32> to vector<8x4xf32>
    %282 = arith.mulf %281, %280 : vector<8x4xf32>
    %cst_63 = arith.constant dense<0.000000e+00> : vector<4xf32>
    %283 = vector.multi_reduction <add>, %282, %cst_63 [0] : vector<8x4xf32> to vector<4xf32>
    %284 = vector.shape_cast %283 : vector<4xf32> to vector<1x4xf32>
    %285 = arith.addf %255, %284 : vector<1x4xf32>
    %286 = vector.broadcast %2 : vector<8x1xf32> to vector<8x4xf32>
    %287 = arith.addf %277, %286 : vector<8x4xf32>
    %cst_64 = arith.constant dense<0xFF800000> : vector<4xf32>
    %288 = vector.multi_reduction <maximumf>, %287, %cst_64 [0] : vector<8x4xf32> to vector<4xf32>
    %289 = vector.shape_cast %288 : vector<4xf32> to vector<1x4xf32>
    %290 = vector.broadcast %289 : vector<1x4xf32> to vector<8x4xf32>
    %291 = arith.subf %287, %290 : vector<8x4xf32>
    %292 = math.exp %291 : vector<8x4xf32>
    %cst_65 = arith.constant dense<0.000000e+00> : vector<4xf32>
    %293 = vector.multi_reduction <add>, %292, %cst_65 [0] : vector<8x4xf32> to vector<4xf32>
    %294 = vector.shape_cast %293 : vector<4xf32> to vector<1x4xf32>
    %295 = math.log %294 : vector<1x4xf32>
    %296 = arith.addf %289, %295 : vector<1x4xf32>
    %297 = arith.subf %285, %296 : vector<1x4xf32>
    %c0_66 = arith.constant 0 : index
    %c0_67 = arith.constant 0 : index
    %298 = vector.load %arg7[%c0_66, %c0_67] : memref<1x4xf32, #tpu.memory_space<vmem>>, vector<1x4xf32>
    tpu.vector_store %arg7[%c0_66, %c0_67], %297 {strides = array<i32>} : memref<1x4xf32, #tpu.memory_space<vmem>>, vector<1x4xf32>,
    return
  }
  func.func @transform_0(%arg0: i32) -> (i32, i32, i32) {
    %c0_i32 = arith.constant 0 : i32
    %c0_i32_0 = arith.constant 0 : i32
    %c0_i32_1 = arith.constant 0 : i32
    return %c0_i32, %c0_i32_0, %arg0 : i32, i32, i32
  }
  func.func @transform_1(%arg0: i32) -> (i32, i32) {
    %c0_i32 = arith.constant 0 : i32
    %c0_i32_0 = arith.constant 0 : i32
    return %c0_i32, %arg0 : i32, i32
  }
  func.func @transform_2(%arg0: i32) -> (i32, i32) {
    %c0_i32 = arith.constant 0 : i32
    %c0_i32_0 = arith.constant 0 : i32
    return %c0_i32, %arg0 : i32, i32
  }
  func.func @transform_3(%arg0: i32) -> (i32, i32) {
    %c0_i32 = arith.constant 0 : i32
    %c0_i32_0 = arith.constant 0 : i32
    %c0_i32_1 = arith.constant 0 : i32
    return %c0_i32, %c0_i32_0 : i32, i32
  }
  func.func @transform_4(%arg0: i32) -> (i32, i32) {
    %c0_i32 = arith.constant 0 : i32
    %c0_i32_0 = arith.constant 0 : i32
    %c0_i32_1 = arith.constant 0 : i32
    return %c0_i32, %c0_i32_0 : i32, i32
  }
  func.func @transform_5(%arg0: i32) -> (i32, i32) {
    %c0_i32 = arith.constant 0 : i32
    %c0_i32_0 = arith.constant 0 : i32
    %c0_i32_1 = arith.constant 0 : i32
    return %c0_i32, %c0_i32_0 : i32, i32
  }
  func.func @transform_6(%arg0: i32) -> (i32, i32) {
    %c0_i32 = arith.constant 0 : i32
    %c0_i32_0 = arith.constant 0 : i32
    return %c0_i32, %arg0 : i32, i32
  }
}

</mosaic_0001>

<bundles_post_ra>
// kernel: tpu_custom_call.1
= control target key start
LH: loop header
LB: loop body
LE: loop exit
PB: predicated region body
PF: predicated region fallthrough
CT: control target
= control target key end

     0   :  { %vm27_vm0 = vcmask 64512   ;;  %v2338_v2 = vmov 0   ;;  %s2330_s0 = inlined_call_operand.vmem [shape: f32[6,8,4], index: 0, kind: input, shape index: {}]   ;;  %s2331_s1 = inlined_call_operand.vmem [shape: s32[6,4], index: 1, kind: input, shape index: {}]   ;;  %s2332_s2 = inlined_call_operand.vmem [shape: f32[6,4], index: 2, kind: input, shape index: {}]   ;;  %s2333_s3 = inlined_call_operand.vmem [shape: f32[8,1], index: 3, kind: input, shape index: {}]   ;;  %s2334_s4 = inlined_call_operand.vmem [shape: f32[8,1], index: 4, kind: input, shape index: {}]   ;;  %s2335_s5 = inlined_call_operand.vmem [shape: f32[8,8], index: 5, kind: input, shape index: {}]   ;;  %s2336_s6 = inlined_call_operand.hbm [shape: f32[1,4], index: 6, kind: output, shape index: {}]  }
   0x1   :  { %v24_v0 = vld [vmem:[%s2335_s5] sm:$0xff]  ;;  %1400 = vset.pattern.permute.xlu0 %v2338_v2  ;;  %1401 = vset.pattern.permute.xlu1 %v2338_v2 }
   0x2   :  { %v28_v1 = vsel %vm27_vm0, %v24_v0, -inf }
   0x3   :  { %11 = vsyncpa [#allocation3], 0  ;;  %29 = vmax.xlane.f32.xlu0 %v28_v1  ;;  %v25_v3 = vld [vmem:[%s2333_s3] sm:$0xff]  ;;  %v34_v4 = vlaneseq  ;;  %vm51_vm1 = vcmask 31744   ;;  %vm208_vm3 = vcmask 1041409   ;;  %vm210_vm4 = vcmask 1042434  }
   0x4   :  { %v26_v29 = vld [vmem:[%s2334_s4] sm:$0xff]  ;;  %vm212_vm5 = vcmask 1043459   ;;  %vm214_vm6 = vcmask 1044484   ;;  %vm216_vm7 = vcmask 1045509   ;;  %vm218_vm8 = vcmask 1046534   ;;  %s1529_s19 = smov [#allocation2]  }
   0x5   :  { %v1573_v5 = vshrl.u32 %v34_v4, 7  ;;  %v1596_v35 = vld [vmem:[%s2330_s0] sm:$0xff]  ;;  %vm220_vm9 = vcmask 1047559   ;;  %s1372_s20 = sshll.u32 %s1529_s19, 4  ;;  %s1373_s20 = int_to_ptr.vmem [resolvable:$true] %s1372_s20 }
   0x6   :  { %s1505_s21 = scalar_lea.vmem %s1373_s20, 16  ;;  %s1509_s22 = scalar_lea.vmem %s1373_s20, 32 }
   0x7   :  { %2365 = vst [vmem:[#allocation5_spill] sm:$0xff] %v1573_v5  ;;  %v103_v6 = vsub.s32 3, %v1573_v5  ;;  %v117_v8 = vsub.s32 5, %v1573_v5  ;;  %v131_v10 = vsub.s32 7, %v1573_v5  ;;  %v1582_v15 = vsub.s32 0, %v1573_v5  ;;  %p1506_p0 = scmp.ne.s32.totalorder %s1373_s20, %s1505_s21  ;;  %p1510_p1 = scmp.lt.s32.totalorder %s1373_s20, %s1373_s20 }
   0x8   :  { %v89_v18 = vsub.s32 1, %v1573_v5  ;;  %v96_v20 = vsub.s32 2, %v1573_v5  ;;  %v110_v23 = vsub.s32 4, %v1573_v5  ;;  %v124_v26 = vsub.s32 6, %v1573_v5  ;;  %p1511_p2 = scmp.lt.s32.totalorder %s1509_s22, %s1505_s21 }
   0x9   :  { %v104_v7 = vrot.slane %v24_v0, %v103_v6  ;;  %v118_v9 = vrot.slane %v24_v0, %v117_v8  ;;  %v132_v11 = vrot.slane %v24_v0, %v131_v10  ;;  %v83_v30 = vrot.slane %v24_v0, %v1582_v15 }
   0xa   :  { %v90_v31 = vrot.slane %v24_v0, %v89_v18  ;;  %v97_v32 = vrot.slane %v24_v0, %v96_v20  ;;  %v111_v33 = vrot.slane %v24_v0, %v110_v23  ;;  %v125_v34 = vrot.slane %v24_v0, %v124_v26  ;;  %p1512_p3 = por %p1511_p2, %p1510_p1 }
   0xc   :  { %p1513_p4 = pnand %p1512_p3, %p1506_p0 }
  0x19   :  { %47 = vperm.xlu0 %1400, %v25_v3  }
  0x1d   :  { %106 = vbcast.lane.b32.xlu0 %v104_v7, 256 }
  0x21   :  { %120 = vbcast.lane.b32.xlu0 %v118_v9, 256 }
  0x25   :  { %134 = vbcast.lane.b32.xlu0 %v132_v11, 256 }
  0x8c   :  { %v1578_v12 = vpop.xlane.xlu0 %29 }
  0x8d   :  { %2366 = vst [vmem:[#allocation6_spill] sm:$0xff] %v1578_v12  ;;  %v31_v13 = vsub.f32 %v24_v0, %v1578_v12 }
  0x8f   :  { %v32_v14 = vmul.f32 1.442695, %v31_v13 }
  0x91   :  { %1402 = vpow2.f32 %v32_v14 }
  0x94   :  { %v1598_v36 = vpop.permute.xlu0 %47 }
  0x95   :  { %2367 = vst [vmem:[#allocation7_spill] sm:$0xff] %v1598_v36  ;;  %v1602_v37 = vadd.f32 %v1598_v36, %v1596_v35 }
  0x97   :  { %v242_v38 = vsel %vm51_vm1, %v1602_v37, -inf }
  0x98   :  { %v243_v39 = vrot.slane %v242_v38, 4 }
  0x9a   :  { %v244_v40 = vmax.f32 %v242_v38, %v243_v39 }
  0x9c   :  { %v245_v41 = vrot.slane %v244_v40, 2 }
  0x9e   :  { %v1403_v16 = vpop.eup %1402  ;;  %v246_v42 = vmax.f32 %v244_v40, %v245_v41 }
  0x9f   :  { %v255_v17 = vrot.slane %v1403_v16, %v1582_v15  ;;  %v262_v19 = vrot.slane %v1403_v16, %v89_v18  ;;  %v269_v21 = vrot.slane %v1403_v16, %v96_v20  ;;  %v276_v22 = vrot.slane %v1403_v16, %v103_v6 }
  0xa0   :  { %v283_v24 = vrot.slane %v1403_v16, %v110_v23  ;;  %v290_v25 = vrot.slane %v1403_v16, %v117_v8  ;;  %v297_v27 = vrot.slane %v1403_v16, %v124_v26  ;;  %v304_v28 = vrot.slane %v1403_v16, %v131_v10 }
  0xa1   :  { %257 = vbcast.lane.b32.xlu1 %v255_v17, 256  ;;  %v247_v43 = vrot.slane %v246_v42, 1 }
  0xa3   :  { %v1606_v44 = vmax.f32 %v246_v42, %v247_v43 }
  0xa5   :  { %264 = vbcast.lane.b32.xlu1 %v262_v19, 256  ;;  %v249_v45 = vsub.f32 %v1602_v37, %v1606_v44 }
  0xa7   :  { %v250_v46 = vmul.f32 1.442695, %v249_v45 }
  0xa9   :  { %271 = vbcast.lane.b32.xlu1 %v269_v21, 256  ;;  %1404 = vpow2.f32 %v250_v46 }
  0xad   :  { %278 = vbcast.lane.b32.xlu1 %v276_v22, 256 }
  0xb1   :  { %285 = vbcast.lane.b32.xlu1 %v283_v24, 256 }
  0xb5   :  { %292 = vbcast.lane.b32.xlu1 %v290_v25, 256 }
  0xb6   :  { %v1405_v47 = vpop.eup %1404 }
  0xb9   :  { %299 = vbcast.lane.b32.xlu1 %v297_v27, 256 }
  0xbd   :  { %306 = vbcast.lane.b32.xlu1 %v304_v28, 256 }
  0xc1   :  { %1330 = vperm.xlu1 %1401, %v26_v29  }
  0xc5   :  { %85 = vbcast.lane.b32.xlu1 %v83_v30, 256 }
  0xc9   :  { %92 = vbcast.lane.b32.xlu1 %v90_v31, 256 }
  0xcd   :  { %99 = vbcast.lane.b32.xlu1 %v97_v32, 256 }
  0xd1   :  { %113 = vbcast.lane.b32.xlu1 %v111_v33, 256 }
  0xd5   :  { %127 = vbcast.lane.b32.xlu1 %v125_v34, 256 }
 0x113   :  { %v1610_v48 = vpop.permute.xlu1 %257 }
 0x114   :  { %v308_v49 = vmul.f32 %v1405_v47, %v1610_v48 }
 0x116   :  { %v316_v52 = vsel %vm51_vm1, %v308_v49, 0.0 }
 0x117   :  { %v1613_v50 = vpop.permute.xlu1 %264  ;;  %v317_v55 = vrot.slane %v316_v52, 4 }
 0x118   :  { %v309_v51 = vmul.f32 %v1405_v47, %v1613_v50 }
 0x119   :  { %v318_v61 = vadd.f32 %v317_v55, %v316_v52 }
 0x11a   :  { %v323_v53 = vsel %vm51_vm1, %v309_v51, 0.0 }
 0x11b   :  { %v1618_v54 = vpop.permute.xlu1 %271  ;;  %v324_v57 = vrot.slane %v323_v53, 4  ;;  %v319_v6 = vrot.slane %v318_v61, 2 }
 0x11c   :  { %v310_v56 = vmul.f32 %v1405_v47, %v1618_v54 }
 0x11d   :  { %v325_v63 = vadd.f32 %v324_v57, %v323_v53  ;;  %v320_v17 = vadd.f32 %v319_v6, %v318_v61 }
 0x11e   :  { %v330_v58 = vsel %vm51_vm1, %v310_v56, 0.0 }
 0x11f   :  { %v331_v59 = vrot.slane %v330_v58, 4  ;;  %v1622_v60 = vpop.permute.xlu1 %278  ;;  %v326_v8 = vrot.slane %v325_v63, 2  ;;  %v321_v27 = vrot.slane %v320_v17, 1 }
 0x120   :  { %v311_v62 = vmul.f32 %v1405_v47, %v1622_v60 }
 0x121   :  { %v332_v0 = vadd.f32 %v331_v59, %v330_v58  ;;  %v327_v19 = vadd.f32 %v326_v8, %v325_v63  ;;  %v322_v41 = vadd.f32 %v321_v27, %v320_v17 }
 0x122   :  { %v337_v1 = vsel %vm51_vm1, %v311_v62, 0.0 }
 0x123   :  { %v338_v3 = vrot.slane %v337_v1, 4  ;;  %v1626_v4 = vpop.permute.xlu1 %285  ;;  %v333_v10 = vrot.slane %v332_v0, 2  ;;  %v328_v29 = vrot.slane %v327_v19, 1  ;;  %1406 = vlog2.f32 %v322_v41 }
 0x124   :  { %v312_v7 = vmul.f32 %v1405_v47, %v1626_v4 }
 0x125   :  { %v339_v9 = vadd.f32 %v338_v3, %v337_v1  ;;  %v334_v21 = vadd.f32 %v333_v10, %v332_v0  ;;  %v329_v45 = vadd.f32 %v328_v29, %v327_v19  ;;  %v1648_v19 = vld [vmem:[%s2330_s0 + $0x8] sm:$0xff] }
 0x126   :  { %v344_v11 = vsel %vm51_vm1, %v312_v7, 0.0 }
 0x127   :  { %v340_v13 = vrot.slane %v339_v9, 2  ;;  %v345_v14 = vrot.slane %v344_v11, 4  ;;  %v1630_v16 = vpop.permute.xlu1 %292  ;;  %v335_v32 = vrot.slane %v334_v21, 1  ;;  %1408 = vlog2.f32 %v329_v45 }
 0x128   :  { %v313_v18 = vmul.f32 %v1405_v47, %v1630_v16 }
 0x129   :  { %v346_v20 = vadd.f32 %v345_v14, %v344_v11  ;;  %v341_v23 = vadd.f32 %v340_v13, %v339_v9  ;;  %v336_v51 = vadd.f32 %v335_v32, %v334_v21  ;;  %v71_v9 = vld [vmem:[%s2332_s2 + $0x1] sm:$0x1] }
 0x12a   :  { %v351_v22 = vsel %vm51_vm1, %v313_v18, 0.0  ;;  %vm407_vm2 = vcmp.gt.f32.partialorder %v71_v9, 0.5 }
 0x12b   :  { %v347_v24 = vrot.slane %v346_v20, 2  ;;  %v352_v25 = vrot.slane %v351_v22, 4  ;;  %v1634_v26 = vpop.permute.xlu1 %299  ;;  %v342_v34 = vrot.slane %v341_v23, 1  ;;  %1410 = vlog2.f32 %v336_v51 }
 0x12c   :  { %2368 = vst [vmem:[#allocation8_spill] sm:$0xff] %v1634_v26  ;;  %v314_v28 = vmul.f32 %v1405_v47, %v1634_v26 }
 0x12d   :  { %v348_v30 = vadd.f32 %v347_v24, %v346_v20  ;;  %v353_v31 = vadd.f32 %v352_v25, %v351_v22  ;;  %v343_v53 = vadd.f32 %v342_v34, %v341_v23  ;;  %v408_v23 = vsel %vm407_vm2, 1, %v2338_v2 }
 0x12e   :  { %v358_v33 = vsel %vm51_vm1, %v314_v28, 0.0  ;;  %v372_v28 = vadd.f32 %v1648_v19, %v1606_v44 }
 0x12f   :  { %v354_v38 = vrot.slane %v353_v31, 2  ;;  %v359_v39 = vrot.slane %v358_v33, 4  ;;  %v1638_v40 = vpop.permute.xlu1 %306  ;;  %v349_v42 = vrot.slane %v348_v30, 1  ;;  %1412 = vlog2.f32 %v343_v53 }
 0x130   :  { %2369 = vst [vmem:[#allocation9_spill] sm:$0xff] %v1638_v40  ;;  %v315_v43 = vmul.f32 %v1405_v47, %v1638_v40  ;;  %v1407_v7 = vpop.eup %1406  ;;  %v373_v41 = vadd.f32 %v372_v28, %v1578_v12 }
 0x131   :  { %v355_v46 = vadd.f32 %v354_v38, %v353_v31  ;;  %v360_v49 = vadd.f32 %v359_v39, %v358_v33  ;;  %v350_v58 = vadd.f32 %v349_v42, %v348_v30  ;;  %v375_v20 = vmul.f32 0.6931472, %v1407_v7 }
 0x132   :  { %v365_v52 = vsel %vm51_vm1, %v315_v43, 0.0  ;;  %v412_v31 = vrot.slane %v408_v23, %v1582_v15  ;;  %v2370_v42 = vmov 0 }
 0x133   :  { %v356_v55 = vrot.slane %v355_v46, 1  ;;  %v361_v56 = vrot.slane %v360_v49, 2  ;;  %v366_v57 = vrot.slane %v365_v52, 4  ;;  %1414 = vlog2.f32 %v350_v58 }
 0x134   :  { %v1409_v8 = vpop.eup %1408  ;;  %vm1661_vm10 = vcmp.eq.s32.totalorder %v412_v31, 1 }
 0x135   :  { %v357_v59 = vadd.f32 %v356_v55, %v355_v46  ;;  %v362_v61 = vadd.f32 %v361_v56, %v360_v49  ;;  %v367_v62 = vadd.f32 %v366_v57, %v365_v52  ;;  %v377_v14 = vmul.f32 0.6931472, %v1409_v8 }
 0x136   :  { %v2371_v42 = vsel %vm1661_vm10, 4294967295, %v2370_v42 }
 0x137   :  { %v363_v63 = vrot.slane %v362_v61, 1  ;;  %v368_v47 = vrot.slane %v367_v62, 2  ;;  %1416 = vlog2.f32 %v357_v59  ;;  %v398_v25 = vsel %vm208_vm3, %v377_v14, %v375_v20  ;;  %2372 = vst [vmem:[#allocation10_spill] sm:$0xff] %v2371_v42 }
 0x138   :  { %v1411_v10 = vpop.eup %1410 }
 0x139   :  { %v364_v0 = vadd.f32 %v363_v63, %v362_v61  ;;  %v369_v1 = vadd.f32 %v368_v47, %v367_v62  ;;  %v379_v18 = vmul.f32 0.6931472, %v1411_v10 }
 0x13b   :  { %1418 = vlog2.f32 %v364_v0  ;;  %v370_v3 = vrot.slane %v369_v1, 1  ;;  %v399_v29 = vsel %vm210_vm4, %v379_v18, %v398_v25 }
 0x13c   :  { %v1413_v11 = vpop.eup %1412 }
 0x13d   :  { %v371_v6 = vadd.f32 %v370_v3, %v369_v1  ;;  %v381_v21 = vmul.f32 0.6931472, %v1413_v11 }
 0x13f   :  { %1420 = vlog2.f32 %v371_v6  ;;  %v400_v32 = vsel %vm212_vm5, %v381_v21, %v399_v29 }
 0x140   :  { %v1415_v13 = vpop.eup %1414 }
 0x141   :  { %v383_v24 = vmul.f32 0.6931472, %v1415_v13 }
 0x143   :  { %v401_v34 = vsel %vm214_vm6, %v383_v24, %v400_v32 }
 0x144   :  { %v1417_v17 = vpop.eup %1416 }
 0x145   :  { %v385_v27 = vmul.f32 0.6931472, %v1417_v17 }
 0x147   :  { %v402_v38 = vsel %vm216_vm7, %v385_v27, %v401_v34 }
 0x148   :  { %v1419_v22 = vpop.eup %1418 }
 0x149   :  { %v387_v30 = vmul.f32 0.6931472, %v1419_v22 }
 0x14b   :  { %v403_v44 = vsel %vm218_vm8, %v387_v30, %v402_v38 }
 0x14c   :  { %v1421_v33 = vpop.eup %1420 }
 0x14d   :  { %v389_v39 = vmul.f32 0.6931472, %v1421_v33 }
 0x14f   :  { %v404_v43 = vsel %vm220_vm9, %v389_v39, %v403_v44 }
 0x150   :  { %v406_v45 = vadd.f32 %v404_v43, %v373_v41 }
 0x152   :  { %v1669_v46 = vsel %vm1661_vm10, %v406_v45, %v1602_v37 }
 0x153   :  { %v526_v49 = vsel %vm51_vm1, %v1669_v46, -inf }
 0x154   :  { %v527_v51 = vrot.slane %v526_v49, 4 }
 0x156   :  { %v528_v52 = vmax.f32 %v526_v49, %v527_v51 }
 0x158   :  { %v529_v53 = vrot.slane %v528_v52, 2 }
 0x15a   :  { %v530_v55 = vmax.f32 %v528_v52, %v529_v53 }
 0x15c   :  { %v531_v56 = vrot.slane %v530_v55, 1 }
 0x15e   :  { %v1673_v57 = vmax.f32 %v530_v55, %v531_v56 }
 0x160   :  { %v533_v58 = vsub.f32 %v1669_v46, %v1673_v57 }
 0x162   :  { %v534_v59 = vmul.f32 1.442695, %v533_v58 }
 0x164   :  { %1422 = vpow2.f32 %v534_v59 }
 0x171   :  { %v1423_v61 = vpop.eup %1422 }
 0x172   :  { %v536_v62 = vmul.f32 %v1423_v61, %v1610_v48  ;;  %v537_v37 = vmul.f32 %v1423_v61, %v1613_v50  ;;  %v538_v63 = vmul.f32 %v1423_v61, %v1618_v54  ;;  %v539_v47 = vmul.f32 %v1423_v61, %v1622_v60 }
 0x173   :  { %v540_v0 = vmul.f32 %v1423_v61, %v1626_v4  ;;  %v541_v1 = vmul.f32 %v1423_v61, %v1630_v16  ;;  %v542_v3 = vmul.f32 %v1423_v61, %v1634_v26  ;;  %v543_v6 = vmul.f32 %v1423_v61, %v1638_v40 }
 0x174   :  { %v544_v7 = vsel %vm51_vm1, %v536_v62, 0.0  ;;  %v551_v8 = vsel %vm51_vm1, %v537_v37, 0.0  ;;  %v558_v9 = vsel %vm51_vm1, %v538_v63, 0.0  ;;  %v565_v10 = vsel %vm51_vm1, %v539_v47, 0.0 }
 0x175   :  { %v545_v11 = vrot.slane %v544_v7, 4  ;;  %v552_v13 = vrot.slane %v551_v8, 4  ;;  %v559_v14 = vrot.slane %v558_v9, 4  ;;  %v566_v17 = vrot.slane %v565_v10, 4 }
 0x176   :  { %v572_v18 = vsel %vm51_vm1, %v540_v0, 0.0  ;;  %v579_v20 = vsel %vm51_vm1, %v541_v1, 0.0  ;;  %v586_v21 = vsel %vm51_vm1, %v542_v3, 0.0  ;;  %v593_v22 = vsel %vm51_vm1, %v543_v6, 0.0 }
 0x177   :  { %v546_v23 = vadd.f32 %v545_v11, %v544_v7  ;;  %v553_v24 = vadd.f32 %v552_v13, %v551_v8  ;;  %v560_v25 = vadd.f32 %v559_v14, %v558_v9  ;;  %v567_v27 = vadd.f32 %v566_v17, %v565_v10 }
 0x178   :  { %v573_v28 = vrot.slane %v572_v18, 4  ;;  %v580_v29 = vrot.slane %v579_v20, 4  ;;  %v587_v30 = vrot.slane %v586_v21, 4  ;;  %v594_v31 = vrot.slane %v593_v22, 4 }
 0x179   :  { %v547_v32 = vrot.slane %v546_v23, 2  ;;  %v554_v33 = vrot.slane %v553_v24, 2  ;;  %v561_v34 = vrot.slane %v560_v25, 2  ;;  %v568_v38 = vrot.slane %v567_v27, 2 }
 0x17a   :  { %v574_v39 = vadd.f32 %v573_v28, %v572_v18  ;;  %v581_v41 = vadd.f32 %v580_v29, %v579_v20  ;;  %v588_v44 = vadd.f32 %v587_v30, %v586_v21  ;;  %v595_v43 = vadd.f32 %v594_v31, %v593_v22  ;;  %v418_v22 = vld [vmem:[%s2332_s2 + $0x2] sm:$0x1] }
 0x17b   :  { %v548_v45 = vadd.f32 %v547_v32, %v546_v23  ;;  %v555_v49 = vadd.f32 %v554_v33, %v553_v24  ;;  %v562_v51 = vadd.f32 %v561_v34, %v560_v25  ;;  %v569_v52 = vadd.f32 %v568_v38, %v567_v27  ;;  %v1385_v27 = vld [vmem:[%s2330_s0 + $0x10] sm:$0xff] }
 0x17c   :  { %v575_v53 = vrot.slane %v574_v39, 2  ;;  %v582_v55 = vrot.slane %v581_v41, 2  ;;  %v589_v56 = vrot.slane %v588_v44, 2  ;;  %v596_v58 = vrot.slane %v595_v43, 2 }
 0x17d   :  { %v549_v59 = vrot.slane %v548_v45, 1  ;;  %v556_v61 = vrot.slane %v555_v49, 1  ;;  %v563_v62 = vrot.slane %v562_v51, 1  ;;  %v570_v37 = vrot.slane %v569_v52, 1 }
 0x17e   :  { %v576_v63 = vadd.f32 %v575_v53, %v574_v39  ;;  %v583_v47 = vadd.f32 %v582_v55, %v581_v41  ;;  %v590_v0 = vadd.f32 %v589_v56, %v588_v44  ;;  %v597_v1 = vadd.f32 %v596_v58, %v595_v43 }
 0x17f   :  { %v550_v3 = vadd.f32 %v549_v59, %v548_v45  ;;  %v557_v6 = vadd.f32 %v556_v61, %v555_v49  ;;  %v564_v7 = vadd.f32 %v563_v62, %v562_v51  ;;  %v571_v11 = vadd.f32 %v570_v37, %v569_v52 }
 0x180   :  { %v577_v8 = vrot.slane %v576_v63, 1  ;;  %v584_v9 = vrot.slane %v583_v47, 1  ;;  %v591_v10 = vrot.slane %v590_v0, 1  ;;  %v598_v13 = vrot.slane %v597_v1, 1 }
 0x181   :  { %1424 = vlog2.f32 %v550_v3  ;;  %vm635_vm11 = vcmp.gt.f32.partialorder %v418_v22, 0.5  ;;  %v600_v39 = vadd.f32 %v1385_v27, %v1673_v57  ;;  %v2373_v37 = vmov 0 }
 0x182   :  { %v578_v14 = vadd.f32 %v577_v8, %v576_v63  ;;  %v585_v17 = vadd.f32 %v584_v9, %v583_v47  ;;  %1426 = vlog2.f32 %v557_v6  ;;  %v592_v18 = vadd.f32 %v591_v10, %v590_v0 }
 0x183   :  { %1428 = vlog2.f32 %v564_v7  ;;  %v599_v20 = vadd.f32 %v598_v13, %v597_v1  ;;  %v636_v38 = vsel %vm635_vm11, 1, %v2338_v2  ;;  %v601_v59 = vadd.f32 %v600_v39, %v1578_v12 }
 0x184   :  { %1430 = vlog2.f32 %v571_v11  ;;  %v640_v55 = vrot.slane %v636_v38, %v1582_v15 }
 0x185   :  { %1432 = vlog2.f32 %v578_v14 }
 0x186   :  { %1434 = vlog2.f32 %v585_v17  ;;  %vm1710_vm12 = vcmp.eq.s32.totalorder %v640_v55, 1 }
 0x187   :  { %1436 = vlog2.f32 %v592_v18  ;;  %v2374_v37 = vsel %vm1710_vm12, 4294967295, %v2373_v37 }
 0x188   :  { %1438 = vlog2.f32 %v599_v20  ;;  %2375 = vst [vmem:[#allocation11_spill] sm:$0xff] %v2374_v37 }
 0x18e   :  { %v1425_v21 = vpop.eup %1424 }
 0x18f   :  { %v603_v23 = vmul.f32 0.6931472, %v1425_v21  ;;  %v1427_v24 = vpop.eup %1426 }
 0x190   :  { %v1429_v25 = vpop.eup %1428  ;;  %v605_v28 = vmul.f32 0.6931472, %v1427_v24 }
 0x191   :  { %v1431_v29 = vpop.eup %1430  ;;  %v607_v30 = vmul.f32 0.6931472, %v1429_v25 }
 0x192   :  { %v1433_v31 = vpop.eup %1432  ;;  %v609_v32 = vmul.f32 0.6931472, %v1431_v29  ;;  %v626_v33 = vsel %vm208_vm3, %v605_v28, %v603_v23 }
 0x193   :  { %v1435_v34 = vpop.eup %1434  ;;  %v611_v41 = vmul.f32 0.6931472, %v1433_v31  ;;  %v627_v44 = vsel %vm210_vm4, %v607_v30, %v626_v33 }
 0x194   :  { %v1437_v43 = vpop.eup %1436  ;;  %v613_v45 = vmul.f32 0.6931472, %v1435_v34  ;;  %v628_v49 = vsel %vm212_vm5, %v609_v32, %v627_v44 }
 0x195   :  { %v1439_v51 = vpop.eup %1438  ;;  %v615_v52 = vmul.f32 0.6931472, %v1437_v43  ;;  %v629_v53 = vsel %vm214_vm6, %v611_v41, %v628_v49 }
 0x196   :  { %v617_v56 = vmul.f32 0.6931472, %v1439_v51  ;;  %v630_v58 = vsel %vm216_vm7, %v613_v45, %v629_v53 }
 0x197   :  { %v631_v57 = vsel %vm218_vm8, %v615_v52, %v630_v58 }
 0x198   :  { %v632_v61 = vsel %vm220_vm9, %v617_v56, %v631_v57 }
 0x199   :  { %v634_v62 = vadd.f32 %v632_v61, %v601_v59 }
 0x19b   :  { %v1717_v63 = vsel %vm1710_vm12, %v634_v62, %v1669_v46 }
 0x19c   :  { %v754_v47 = vsel %vm51_vm1, %v1717_v63, -inf }
 0x19d   :  { %v755_v0 = vrot.slane %v754_v47, 4 }
 0x19f   :  { %v756_v1 = vmax.f32 %v754_v47, %v755_v0 }
 0x1a1   :  { %v757_v3 = vrot.slane %v756_v1, 2 }
 0x1a3   :  { %v758_v6 = vmax.f32 %v756_v1, %v757_v3 }
 0x1a5   :  { %v759_v7 = vrot.slane %v758_v6, 1 }
 0x1a7   :  { %v1721_v8 = vmax.f32 %v758_v6, %v759_v7 }
 0x1a9   :  { %v761_v9 = vsub.f32 %v1717_v63, %v1721_v8 }
 0x1ab   :  { %v762_v10 = vmul.f32 1.442695, %v761_v9 }
 0x1ad   :  { %1440 = vpow2.f32 %v762_v10 }
 0x1ba   :  { %v1441_v11 = vpop.eup %1440 }
 0x1bb   :  { %v771_v13 = vmul.f32 %v1441_v11, %v1638_v40  ;;  %v764_v46 = vmul.f32 %v1441_v11, %v1610_v48  ;;  %v765_v14 = vmul.f32 %v1441_v11, %v1613_v50  ;;  %v766_v17 = vmul.f32 %v1441_v11, %v1618_v54 }
 0x1bc   :  { %v767_v18 = vmul.f32 %v1441_v11, %v1622_v60  ;;  %v768_v20 = vmul.f32 %v1441_v11, %v1626_v4  ;;  %v769_v21 = vmul.f32 %v1441_v11, %v1630_v16  ;;  %v770_v22 = vmul.f32 %v1441_v11, %v1634_v26 }
 0x1bd   :  { %v821_v23 = vsel %vm51_vm1, %v771_v13, 0.0  ;;  %v772_v24 = vsel %vm51_vm1, %v764_v46, 0.0  ;;  %v779_v25 = vsel %vm51_vm1, %v765_v14, 0.0  ;;  %v786_v27 = vsel %vm51_vm1, %v766_v17, 0.0 }
 0x1be   :  { %v822_v28 = vrot.slane %v821_v23, 4  ;;  %v773_v29 = vrot.slane %v772_v24, 4  ;;  %v780_v30 = vrot.slane %v779_v25, 4  ;;  %v787_v31 = vrot.slane %v786_v27, 4 }
 0x1bf   :  { %v793_v32 = vsel %vm51_vm1, %v767_v18, 0.0  ;;  %v800_v33 = vsel %vm51_vm1, %v768_v20, 0.0  ;;  %v807_v34 = vsel %vm51_vm1, %v769_v21, 0.0  ;;  %v814_v38 = vsel %vm51_vm1, %v770_v22, 0.0 }
 0x1c0   :  { %v823_v39 = vadd.f32 %v822_v28, %v821_v23  ;;  %v774_v41 = vadd.f32 %v773_v29, %v772_v24  ;;  %v781_v44 = vadd.f32 %v780_v30, %v779_v25  ;;  %v788_v43 = vadd.f32 %v787_v31, %v786_v27 }
 0x1c1   :  { %v794_v45 = vrot.slane %v793_v32, 4  ;;  %v801_v49 = vrot.slane %v800_v33, 4  ;;  %v808_v51 = vrot.slane %v807_v34, 4  ;;  %v815_v52 = vrot.slane %v814_v38, 4 }
 0x1c2   :  { %v824_v53 = vrot.slane %v823_v39, 2  ;;  %v775_v55 = vrot.slane %v774_v41, 2  ;;  %v782_v56 = vrot.slane %v781_v44, 2  ;;  %v789_v58 = vrot.slane %v788_v43, 2 }
 0x1c3   :  { %v795_v59 = vadd.f32 %v794_v45, %v793_v32  ;;  %v802_v57 = vadd.f32 %v801_v49, %v800_v33  ;;  %v809_v61 = vadd.f32 %v808_v51, %v807_v34  ;;  %v816_v62 = vadd.f32 %v815_v52, %v814_v38 }
 0x1c4   :  { %v825_v47 = vadd.f32 %v824_v53, %v823_v39  ;;  %v776_v0 = vadd.f32 %v775_v55, %v774_v41  ;;  %v783_v1 = vadd.f32 %v782_v56, %v781_v44  ;;  %v790_v3 = vadd.f32 %v789_v58, %v788_v43  ;;  %v646_v39 = vld [vmem:[%s2332_s2 + $0x3] sm:$0x1]  ;;  %v1388_v55 = vld [vmem:[%s2330_s0 + $0x18] sm:$0xff] }
 0x1c5   :  { %v796_v6 = vrot.slane %v795_v59, 2  ;;  %v803_v7 = vrot.slane %v802_v57, 2  ;;  %v810_v9 = vrot.slane %v809_v61, 2  ;;  %v817_v10 = vrot.slane %v816_v62, 2 }
 0x1c6   :  { %v826_v11 = vrot.slane %v825_v47, 1  ;;  %v777_v13 = vrot.slane %v776_v0, 1  ;;  %v784_v46 = vrot.slane %v783_v1, 1  ;;  %v791_v14 = vrot.slane %v790_v3, 1 }
 0x1c7   :  { %v797_v17 = vadd.f32 %v796_v6, %v795_v59  ;;  %v804_v18 = vadd.f32 %v803_v7, %v802_v57  ;;  %v811_v20 = vadd.f32 %v810_v9, %v809_v61  ;;  %v818_v21 = vadd.f32 %v817_v10, %v816_v62  ;;  %v1380_v6 = vld [vmem:[%s2331_s1] ss:$0 sm:$0xff] }
 0x1c8   :  { %v827_v22 = vadd.f32 %v826_v11, %v825_v47  ;;  %v778_v23 = vadd.f32 %v777_v13, %v776_v0  ;;  %v785_v24 = vadd.f32 %v784_v46, %v783_v1  ;;  %v792_v29 = vadd.f32 %v791_v14, %v790_v3 }
 0x1c9   :  { %v798_v25 = vrot.slane %v797_v17, 1  ;;  %v805_v27 = vrot.slane %v804_v18, 1  ;;  %v812_v28 = vrot.slane %v811_v20, 1  ;;  %v819_v30 = vrot.slane %v818_v21, 1 }
 0x1ca   :  { %1442 = vlog2.f32 %v827_v22  ;;  %vm863_vm13 = vcmp.gt.f32.partialorder %v646_v39, 0.5  ;;  %v828_v61 = vadd.f32 %v1388_v55, %v1721_v8  ;;  %vm42_vm14 = vcmp.eq.s32.totalorder %v1380_v6, %v1573_v5 }
 0x1cb   :  { %v799_v31 = vadd.f32 %v798_v25, %v797_v17  ;;  %v806_v32 = vadd.f32 %v805_v27, %v804_v18  ;;  %1444 = vlog2.f32 %v778_v23  ;;  %v813_v33 = vadd.f32 %v812_v28, %v811_v20  ;;  %v1383_v17 = vld [vmem:[%s2331_s1 + $0x1] ss:$0 sm:$0xff]  ;;  %v1386_v20 = vld [vmem:[%s2331_s1 + $0x2] ss:$0 sm:$0xff]  ;;  %v107_v27 = vpop.permute.xlu0 %106 }
 0x1cc   :  { %1446 = vlog2.f32 %v785_v24  ;;  %v820_v34 = vadd.f32 %v819_v30, %v818_v21  ;;  %v864_v57 = vsel %vm863_vm13, 1, %v2338_v2  ;;  %v829_v8 = vadd.f32 %v828_v61, %v1578_v12  ;;  %v1389_v21 = vld [vmem:[%s2331_s1 + $0x3] ss:$0 sm:$0xff]  ;;  %v1392_v30 = vld [vmem:[%s2331_s1 + $0x4] ss:$0 sm:$0xff] }
 0x1cd   :  { %1448 = vlog2.f32 %v792_v29  ;;  %v868_v10 = vrot.slane %v864_v57, %v1582_v15  ;;  %v2376_v22 = vmov 0  ;;  %v2337_v23 = vmov 0.0  }
 0x1ce   :  { %1450 = vlog2.f32 %v799_v31  ;;  %v1776_v24 = vsel %vm42_vm14, 1.0, %v2337_v23  ;;  %vm77_vm0 = vcmp.eq.s32.totalorder %v1383_v17, %v1573_v5  ;;  %vm424_vm2 = vcmp.eq.s32.totalorder %v1386_v20, %v1573_v5 }
 0x1cf   :  { %1452 = vlog2.f32 %v806_v32  ;;  %vm1771_vm15 = vcmp.eq.s32.totalorder %v868_v10, 1  ;;  %2379 = vst [vmem:[#allocation13_spill] sm:$0xff] %v1776_v24  ;;  %v139_v29 = vmul.f32 %v1776_v24, %v107_v27  ;;  %vm652_vm11 = vcmp.eq.s32.totalorder %v1389_v21, %v1573_v5 }
 0x1d0   :  { %1454 = vlog2.f32 %v813_v33  ;;  %v2377_v22 = vsel %vm1771_vm15, 4294967295, %v2376_v22  ;;  %v1796_v33 = vsel %vm424_vm2, 1.0, %v2337_v23  ;;  %vm880_vm13 = vcmp.eq.s32.totalorder %v1392_v30, %v1573_v5 }
 0x1d1   :  { %1456 = vlog2.f32 %v820_v34  ;;  %2378 = vst [vmem:[#allocation12_spill] sm:$0xff] %v2377_v22  ;;  %v1799_v34 = vsel %vm652_vm11, 1.0, %v2337_v23 }
 0x1d7   :  { %v1443_v38 = vpop.eup %1442 }
 0x1d8   :  { %v1445_v41 = vpop.eup %1444  ;;  %v845_v11 = vmul.f32 0.6931472, %v1443_v38  ;;  %v165_v38 = vsel %vm51_vm1, %v139_v29, 0.0 }
 0x1d9   :  { %v1447_v44 = vpop.eup %1446  ;;  %v831_v43 = vmul.f32 0.6931472, %v1445_v41 }
 0x1da   :  { %v1449_v45 = vpop.eup %1448  ;;  %v833_v49 = vmul.f32 0.6931472, %v1447_v44  ;;  %v658_v44 = vmul.f32 %v1796_v33, %v107_v27 }
 0x1db   :  { %v1451_v51 = vpop.eup %1450  ;;  %v835_v52 = vmul.f32 0.6931472, %v1449_v45 }
 0x1dc   :  { %v1453_v53 = vpop.eup %1452  ;;  %v837_v56 = vmul.f32 0.6931472, %v1451_v51  ;;  %v854_v58 = vsel %vm208_vm3, %v833_v49, %v831_v43  ;;  %v886_v43 = vmul.f32 %v1799_v34, %v107_v27  ;;  %v1807_v49 = vsel %vm880_vm13, 1.0, %v2337_v23 }
 0x1dd   :  { %v1455_v59 = vpop.eup %1454  ;;  %v839_v62 = vmul.f32 0.6931472, %v1453_v53  ;;  %v855_v47 = vsel %vm210_vm4, %v835_v52, %v854_v58  ;;  %v166_v51 = vrot.slane %v165_v38, 4  ;;  %v684_v55 = vsel %vm51_vm1, %v658_v44, 0.0 }
 0x1de   :  { %v1457_v0 = vpop.eup %1456  ;;  %v841_v1 = vmul.f32 0.6931472, %v1455_v59  ;;  %v856_v3 = vsel %vm212_vm5, %v837_v56, %v855_v47  ;;  %v912_v56 = vsel %vm51_vm1, %v886_v43, 0.0  ;;  %v1114_v58 = vmul.f32 %v1807_v49, %v107_v27 }
 0x1df   :  { %v843_v7 = vmul.f32 0.6931472, %v1457_v0  ;;  %v857_v9 = vsel %vm214_vm6, %v839_v62, %v856_v3  ;;  %v167_v57 = vadd.f32 %v166_v51, %v165_v38  ;;  %v685_v62 = vrot.slane %v684_v55, 4 }
 0x1e0   :  { %v858_v13 = vsel %vm216_vm7, %v841_v1, %v857_v9  ;;  %v913_v47 = vrot.slane %v912_v56, 4  ;;  %v1140_v1 = vsel %vm51_vm1, %v1114_v58, 0.0 }
 0x1e1   :  { %v859_v46 = vsel %vm218_vm8, %v843_v7, %v858_v13  ;;  %v168_v6 = vrot.slane %v167_v57, 2  ;;  %v686_v9 = vadd.f32 %v685_v62, %v684_v55  ;;  %v121_v13 = vpop.permute.xlu0 %120 }
 0x1e2   :  { %v860_v14 = vsel %vm220_vm9, %v845_v11, %v859_v46  ;;  %v914_v10 = vadd.f32 %v913_v47, %v912_v56  ;;  %v1141_v11 = vrot.slane %v1140_v1, 4 }
 0x1e3   :  { %v862_v18 = vadd.f32 %v860_v14, %v829_v8  ;;  %v141_v8 = vmul.f32 %v1776_v24, %v121_v13  ;;  %v660_v14 = vmul.f32 %v1796_v33, %v121_v13  ;;  %v687_v21 = vrot.slane %v686_v9, 2 }
 0x1e5   :  { %v1781_v25 = vsel %vm1771_vm15, %v862_v18, %v1717_v63  ;;  %v1793_v63 = vsel %vm77_vm0, 1.0, %v2337_v23  ;;  %v169_v18 = vadd.f32 %v168_v6, %v167_v57  ;;  %v179_v29 = vsel %vm51_vm1, %v141_v8, 0.0 }
 0x1e6   :  { %v982_v28 = vsel %vm51_vm1, %v1781_v25, -inf  ;;  %v430_v41 = vmul.f32 %v1793_v63, %v107_v27  ;;  %v432_v46 = vmul.f32 %v1793_v63, %v121_v13  ;;  %v231_v17 = vmul.f32 %v1793_v63, %v1648_v19  ;;  %v1832_v19 = vpop.permute.xlu0 %134 }
 0x1e7   :  { %v983_v31 = vrot.slane %v982_v28, 4  ;;  %v915_v27 = vrot.slane %v914_v10, 2  ;;  %v1836_v43 = vadd.f32 %v687_v21, %v686_v9  ;;  %v143_v56 = vmul.f32 %v1776_v24, %v1832_v19 }
 0x1e8   :  { %v456_v53 = vsel %vm51_vm1, %v430_v41, 0.0  ;;  %v470_v30 = vsel %vm51_vm1, %v432_v46, 0.0  ;;  %v1829_v38 = vsel %vm51_vm1, %v231_v17, 0.0  ;;  %v170_v41 = vrot.slane %v169_v18, 1 }
 0x1e9   :  { %v984_v32 = vmax.f32 %v982_v28, %v983_v31  ;;  %v457_v61 = vrot.slane %v456_v53, 4  ;;  %v1142_v28 = vadd.f32 %v1141_v11, %v1140_v1  ;;  %v698_v31 = vsel %vm51_vm1, %v660_v14, 0.0  ;;  %2380 = vst [vmem:[#allocation14_spill] sm:$0xff] %v1829_v38 }
 0x1ea   :  { %v699_v55 = vrot.slane %v698_v31, 4  ;;  %v1850_v62 = vadd.f32 %v170_v41, %v169_v18  ;;  %v1868_v8 = vsel %vm51_vm1, %v143_v56, 0.0  ;;  %v1872_v46 = vmul.f32 %v1793_v63, %v1832_v19 }
 0x1eb   :  { %v985_v39 = vrot.slane %v984_v32, 2  ;;  %v458_v7 = vadd.f32 %v457_v61, %v456_v53  ;;  %v1143_v51 = vrot.slane %v1142_v28, 2  ;;  %v471_v53 = vrot.slane %v470_v30, 4 }
 0x1ec   :  { %2382 = vst [vmem:[#allocation16_spill] sm:$0xff] %v1850_v62  ;;  %v1861_v9 = vadd.f32 %v699_v55, %v698_v31 }
 0x1ed   :  { %v986_v45 = vmax.f32 %v984_v32, %v985_v39  ;;  %v459_v20 = vrot.slane %v458_v7, 2  ;;  %v59_v32 = vmul.f32 %v1776_v24, %v1596_v35  ;;  %v888_v39 = vmul.f32 %v1799_v34, %v121_v13 }
 0x1ee   :  { %v1116_v35 = vmul.f32 %v1807_v49, %v121_v13 }
 0x1ef   :  { %v987_v52 = vrot.slane %v986_v45, 1  ;;  %v1834_v44 = vadd.f32 %v459_v20, %v458_v7  ;;  %v1844_v58 = vsel %vm51_vm1, %v59_v32, 0.0  ;;  %v1848_v61 = vsel %vm51_vm1, %v888_v39, 0.0 }
 0x1f0   :  { %2381 = vst [vmem:[#allocation15_spill] sm:$0xff] %v1844_v58  ;;  %v1859_v7 = vadd.f32 %v471_v53, %v470_v30  ;;  %v927_v11 = vrot.slane %v1848_v61, 4  ;;  %v1865_v13 = vsel %vm51_vm1, %v1116_v35, 0.0 }
 0x1f1   :  { %v1813_v59 = vmax.f32 %v986_v45, %v987_v52  ;;  %v1838_v45 = vadd.f32 %v915_v27, %v914_v10  ;;  %v180_v52 = vrot.slane %v179_v29, 4 }
 0x1f3   :  { %v989_v0 = vsub.f32 %v1781_v25, %v1813_v59  ;;  %v1857_v6 = vadd.f32 %v180_v52, %v179_v29 }
 0x1f5   :  { %v990_v3 = vmul.f32 1.442695, %v989_v0 }
 0x1f7   :  { %1458 = vpow2.f32 %v990_v3  ;;  %v1855_v3 = vadd.f32 %v1143_v51, %v1142_v28 }
 0x204   :  { %v1459_v10 = vpop.eup %1458 }
 0x205   :  { %v992_v14 = vmul.f32 %v1459_v10, %v1610_v48  ;;  %v993_v17 = vmul.f32 %v1459_v10, %v1613_v50  ;;  %v994_v18 = vmul.f32 %v1459_v10, %v1618_v54  ;;  %v995_v20 = vmul.f32 %v1459_v10, %v1622_v60 }
 0x206   :  { %v996_v21 = vmul.f32 %v1459_v10, %v1626_v4  ;;  %v997_v27 = vmul.f32 %v1459_v10, %v1630_v16  ;;  %v998_v28 = vmul.f32 %v1459_v10, %v1634_v26  ;;  %v999_v29 = vmul.f32 %v1459_v10, %v1638_v40 }
 0x207   :  { %v1000_v30 = vsel %vm51_vm1, %v992_v14, 0.0  ;;  %v1007_v31 = vsel %vm51_vm1, %v993_v17, 0.0  ;;  %v1014_v32 = vsel %vm51_vm1, %v994_v18, 0.0  ;;  %v1021_v39 = vsel %vm51_vm1, %v995_v20, 0.0 }
 0x208   :  { %v1001_v41 = vrot.slane %v1000_v30, 4  ;;  %v1008_v51 = vrot.slane %v1007_v31, 4  ;;  %v1015_v52 = vrot.slane %v1014_v32, 4  ;;  %v1022_v53 = vrot.slane %v1021_v39, 4 }
 0x209   :  { %v1028_v55 = vsel %vm51_vm1, %v996_v21, 0.0  ;;  %v1035_v35 = vsel %vm51_vm1, %v997_v27, 0.0  ;;  %v1042_v56 = vsel %vm51_vm1, %v998_v28, 0.0  ;;  %v1049_v10 = vsel %vm51_vm1, %v999_v29, 0.0 }
 0x20a   :  { %v1002_v23 = vadd.f32 %v1001_v41, %v1000_v30  ;;  %v1009_v14 = vadd.f32 %v1008_v51, %v1007_v31  ;;  %v1016_v57 = vadd.f32 %v1015_v52, %v1014_v32  ;;  %v1023_v17 = vadd.f32 %v1022_v53, %v1021_v39 }
 0x20b   :  { %v1029_v1 = vrot.slane %v1028_v55, 4  ;;  %v1036_v18 = vrot.slane %v1035_v35, 4  ;;  %v1043_v0 = vrot.slane %v1042_v56, 4  ;;  %v1050_v20 = vrot.slane %v1049_v10, 4 }
 0x20c   :  { %v1003_v2 = vrot.slane %v1002_v23, 2  ;;  %v1010_v47 = vrot.slane %v1009_v14, 2  ;;  %v1017_v22 = vrot.slane %v1016_v57, 2  ;;  %v1024_v37 = vrot.slane %v1023_v17, 2 }
 0x20d   :  { %v1030_v42 = vadd.f32 %v1029_v1, %v1028_v55  ;;  %v1037_v21 = vadd.f32 %v1036_v18, %v1035_v35  ;;  %v1044_v5 = vadd.f32 %v1043_v0, %v1042_v56  ;;  %v1051_v27 = vadd.f32 %v1050_v20, %v1049_v10 }
 0x20e   :  { %v1004_v38 = vadd.f32 %v1003_v2, %v1002_v23  ;;  %v1011_v28 = vadd.f32 %v1010_v47, %v1009_v14  ;;  %v1018_v58 = vadd.f32 %v1017_v22, %v1016_v57  ;;  %v1025_v29 = vadd.f32 %v1024_v37, %v1023_v17 }
 0x20f   :  { %v1031_v30 = vrot.slane %v1030_v42, 2  ;;  %v1038_v31 = vrot.slane %v1037_v21, 2  ;;  %v1045_v32 = vrot.slane %v1044_v5, 2  ;;  %v1052_v39 = vrot.slane %v1051_v27, 2 }
 0x210   :  { %v1005_v41 = vrot.slane %v1004_v38, 1  ;;  %v1012_v51 = vrot.slane %v1011_v28, 1  ;;  %v1019_v52 = vrot.slane %v1018_v58, 1  ;;  %v1026_v53 = vrot.slane %v1025_v29, 1 }
 0x211   :  { %v1032_v36 = vadd.f32 %v1031_v30, %v1030_v42  ;;  %v1039_v62 = vadd.f32 %v1038_v31, %v1037_v21  ;;  %v1046_v40 = vadd.f32 %v1045_v32, %v1044_v5  ;;  %v1053_v26 = vadd.f32 %v1052_v39, %v1051_v27  ;;  %v1913_v30 = vpop.permute.xlu1 %1330 }
 0x212   :  { %v1006_v1 = vadd.f32 %v1005_v41, %v1004_v38  ;;  %v1013_v55 = vadd.f32 %v1012_v51, %v1011_v28  ;;  %v928_v0 = vadd.f32 %v927_v11, %v1848_v61  ;;  %v1155_v2 = vrot.slane %v1865_v13, 4  ;;  %v1102_v61 = vld [vmem:[%s2332_s2 + $0x5] sm:$0x1]  ;;  %2383 = vst [vmem:[#allocation17_spill] sm:$0xff] %v1913_v30 }
 0x213   :  { %v1020_v22 = vadd.f32 %v1019_v52, %v1018_v58  ;;  %v1033_v37 = vrot.slane %v1032_v36, 1  ;;  %v1040_v23 = vrot.slane %v1039_v62, 1  ;;  %v1047_v57 = vrot.slane %v1046_v40, 1  ;;  %v874_v58 = vld [vmem:[%s2332_s2 + $0x4] sm:$0x1] }
 0x214   :  { %v1027_v47 = vadd.f32 %v1026_v53, %v1025_v29  ;;  %v1054_v35 = vrot.slane %v1053_v26, 1  ;;  %1460 = vlog2.f32 %v1006_v1  ;;  %v194_v56 = vrot.slane %v1868_v8, 4 }
 0x215   :  { %v1034_v10 = vadd.f32 %v1033_v37, %v1032_v36  ;;  %v182_v42 = vrot.slane %v1857_v6, 2  ;;  %v473_v5 = vrot.slane %v1859_v7, 2  ;;  %v484_v38 = vsel %vm51_vm1, %v1872_v46, 0.0 }
 0x216   :  { %v1041_v11 = vadd.f32 %v1040_v23, %v1039_v62  ;;  %1462 = vlog2.f32 %v1013_v55  ;;  %v701_v14 = vrot.slane %v1861_v9, 2  ;;  %v662_v36 = vmul.f32 %v1796_v33, %v1832_v19 }
 0x217   :  { %v1048_v17 = vadd.f32 %v1047_v57, %v1046_v40  ;;  %1464 = vlog2.f32 %v1020_v22  ;;  %v929_v18 = vrot.slane %v928_v0, 2  ;;  %v1156_v46 = vadd.f32 %v1155_v2, %v1865_v13 }
 0x218   :  { %v1055_v20 = vadd.f32 %v1054_v35, %v1053_v26  ;;  %1466 = vlog2.f32 %v1027_v47  ;;  %v195_v21 = vadd.f32 %v194_v56, %v1868_v8  ;;  %v485_v27 = vrot.slane %v484_v38, 4 }
 0x219   :  { %vm1091_vm14 = vcmp.gt.f32.partialorder %v874_v58, 0.5  ;;  %vm1319_vm0 = vcmp.gt.f32.partialorder %v1102_v61, 0.5  ;;  %1468 = vlog2.f32 %v1034_v10  ;;  %v183_v62 = vadd.f32 %v182_v42, %v1857_v6 }
 0x21a   :  { %1470 = vlog2.f32 %v1041_v11  ;;  %v474_v28 = vadd.f32 %v473_v5, %v1859_v7  ;;  %v712_v29 = vsel %vm51_vm1, %v662_v36, 0.0  ;;  %v890_v40 = vmul.f32 %v1799_v34, %v1832_v19  ;;  %v86_v5 = vpop.permute.xlu1 %85 }
 0x21b   :  { %1472 = vlog2.f32 %v1048_v17  ;;  %v702_v26 = vadd.f32 %v701_v14, %v1861_v9  ;;  %v930_v13 = vadd.f32 %v929_v18, %v928_v0  ;;  %v1157_v8 = vrot.slane %v1156_v46, 2 }
 0x21c   :  { %1474 = vlog2.f32 %v1055_v20  ;;  %v2384_v31 = vrot.slane %v1834_v44, 1  ;;  %v196_v32 = vrot.slane %v195_v21, 2  ;;  %v486_v7 = vadd.f32 %v485_v27, %v484_v38 }
 0x21d   :  { %v2385_v39 = vmov 0   ;;  %v2386_v51 = vrot.slane %v1836_v43, 1  ;;  %v1145_v9 = vrot.slane %v1855_v3, 1  ;;  %v713_v53 = vrot.slane %v712_v29, 4 }
 0x21e   :  { %v1919_v6 = vadd.f32 %v2384_v31, %v1834_v44  ;;  %v1092_v41 = vsel %vm1091_vm14, 1, %v2385_v39  ;;  %v1931_v1 = vsel %vm1319_vm0, 1, %v2385_v39  ;;  %v184_v55 = vrot.slane %v183_v62, 1 }
 0x21f   :  { %v1926_v52 = vadd.f32 %v2386_v51, %v1836_v43  ;;  %v475_v44 = vrot.slane %v474_v28, 1  ;;  %v940_v0 = vsel %vm51_vm1, %v890_v40, 0.0  ;;  %v2387_v2 = vrot.slane %v1838_v45, 1 }
 0x220   :  { %v703_v37 = vrot.slane %v702_v26, 1  ;;  %v931_v23 = vrot.slane %v930_v13, 1  ;;  %v1939_v43 = vadd.f32 %v1157_v8, %v1156_v46  ;;  %v1096_v57 = vrot.slane %v1092_v41, %v1582_v15 }
 0x221   :  { %v1937_v22 = vadd.f32 %v2387_v2, %v1838_v45  ;;  %v1942_v47 = vadd.f32 %v196_v32, %v195_v21  ;;  %v487_v35 = vrot.slane %v486_v7, 2  ;;  %v1118_v56 = vmul.f32 %v1807_v49, %v1832_v19  ;;  %v1461_v10 = vpop.eup %1460  ;;  %v1974_v32 = vld [vmem:[%s2330_s0 + $0x20] sm:$0xff] }
 0x222   :  { %2389 = vst [vmem:[#allocation19_spill] sm:$0xff] %v1939_v43  ;;  %v1949_v45 = vadd.f32 %v1145_v9, %v1855_v3  ;;  %v714_v38 = vadd.f32 %v713_v53, %v712_v29  ;;  %v941_v58 = vrot.slane %v940_v0, 4  ;;  %v1059_v61 = vmul.f32 0.6931472, %v1461_v10  ;;  %2395 = vst [vmem:[#allocation25_spill] sm:$0xff] %v1974_v32 }
 0x223   :  { %2388 = vst [vmem:[#allocation18_spill] sm:$0xff] %v1937_v22  ;;  %v136_v11 = vmul.f32 %v1776_v24, %v86_v5  ;;  %v1952_v14 = vadd.f32 %v184_v55, %v183_v62  ;;  %v1954_v36 = vadd.f32 %v475_v44, %v474_v28  ;;  %v1463_v17 = vpop.eup %1462  ;;  %v427_v19 = vmul.f32 %v1793_v63, %v86_v5 }
 0x224   :  { %2390 = vst [vmem:[#allocation20_spill] sm:$0xff] %v1949_v45  ;;  %v1957_v18 = vadd.f32 %v703_v37, %v702_v26  ;;  %v1959_v46 = vadd.f32 %v931_v23, %v930_v13  ;;  %v1465_v3 = vpop.eup %1464  ;;  %v1061_v21 = vmul.f32 0.6931472, %v1463_v17  ;;  %v198_v27 = vrot.slane %v1942_v47, 1 }
 0x225   :  { %2391 = vst [vmem:[#allocation21_spill] sm:$0xff] %v1954_v36  ;;  %v1963_v29 = vadd.f32 %v487_v35, %v486_v7  ;;  %v1966_v62 = vsel %vm51_vm1, %v1118_v56, 0.0  ;;  %v1467_v28 = vpop.eup %1466  ;;  %v1063_v40 = vmul.f32 0.6931472, %v1465_v3  ;;  %v655_v8 = vmul.f32 %v1796_v33, %v86_v5 }
 0x226   :  { %2392 = vst [vmem:[#allocation22_spill] sm:$0xff] %v1957_v18  ;;  %2393 = vst [vmem:[#allocation23_spill] sm:$0xff] %v1959_v46  ;;  %v715_v31 = vrot.slane %v714_v38, 2  ;;  %v1969_v26 = vadd.f32 %v941_v58, %v940_v0  ;;  %v1469_v13 = vpop.eup %1468  ;;  %vm1976_vm2 = vcmp.eq.s32.totalorder %v1096_v57, 1  ;;  %v2396_v39 = vmov 0 }
 0x227   :  { %v2397_v39 = vsel %vm1976_vm2, 4294967295, %v2396_v39  ;;  %v1065_v7 = vmul.f32 0.6931472, %v1467_v28  ;;  %v1082_v41 = vsel %vm208_vm3, %v1061_v21, %v1059_v61  ;;  %v144_v51 = vsel %vm51_vm1, %v136_v11, 0.0  ;;  %v1471_v53 = vpop.eup %1470  ;;  %v93_v28 = vpop.permute.xlu1 %92 }
 0x228   :  { %2394 = vst [vmem:[#allocation24_spill] sm:$0xff] %v1969_v26  ;;  %2398 = vst [vmem:[#allocation26_spill] sm:$0xff] %v2397_v39  ;;  %v883_v9 = vmul.f32 %v1799_v34, %v86_v5  ;;  %v1056_v55 = vadd.f32 %v1974_v32, %v1813_v59  ;;  %v1067_v44 = vmul.f32 0.6931472, %v1469_v13  ;;  %v1083_v0 = vsel %vm210_vm4, %v1063_v40, %v1082_v41  ;;  %v1473_v37 = vpop.eup %1472 }
 0x229   :  { %v435_v2 = vsel %vm51_vm1, %v427_v19, 0.0  ;;  %v1069_v23 = vmul.f32 0.6931472, %v1471_v53  ;;  %v1084_v57 = vsel %vm212_vm5, %v1065_v7, %v1083_v0  ;;  %v1111_v35 = vmul.f32 %v1807_v49, %v86_v5  ;;  %v1475_v10 = vpop.eup %1474 }
 0x22a   :  { %v1169_v56 = vrot.slane %v1966_v62, 4  ;;  %v1071_v58 = vmul.f32 0.6931472, %v1473_v37  ;;  %v1085_v61 = vsel %vm214_vm6, %v1067_v44, %v1084_v57  ;;  %v145_v11 = vrot.slane %v144_v51, 4 }
 0x22b   :  { %v663_v59 = vsel %vm51_vm1, %v655_v8, 0.0  ;;  %v1073_v17 = vmul.f32 0.6931472, %v1475_v10  ;;  %v1086_v3 = vsel %vm216_vm7, %v1069_v23, %v1085_v61  ;;  %v436_v21 = vrot.slane %v435_v2, 4 }
 0x22c   :  { %v891_v19 = vsel %vm51_vm1, %v883_v9, 0.0  ;;  %v1057_v40 = vadd.f32 %v1056_v55, %v1578_v12  ;;  %v1087_v5 = vsel %vm218_vm8, %v1071_v58, %v1086_v3  ;;  %v137_v13 = vmul.f32 %v1776_v24, %v93_v28 }
 0x22d   :  { %v428_v7 = vmul.f32 %v1793_v63, %v93_v28  ;;  %v1088_v41 = vsel %vm220_vm9, %v1073_v17, %v1087_v5  ;;  %v656_v53 = vmul.f32 %v1796_v33, %v93_v28  ;;  %v884_v8 = vmul.f32 %v1799_v34, %v93_v28 }
 0x22e   :  { %v1112_v44 = vmul.f32 %v1807_v49, %v93_v28  ;;  %v1090_v0 = vadd.f32 %v1088_v41, %v1057_v40  ;;  %v2003_v9 = vadd.f32 %v198_v27, %v1942_v47  ;;  %v2006_v37 = vadd.f32 %v715_v31, %v714_v38 }
 0x22f   :  { %v146_v23 = vadd.f32 %v145_v11, %v144_v51  ;;  %v437_v57 = vadd.f32 %v436_v21, %v435_v2  ;;  %v664_v10 = vrot.slane %v663_v59, 4  ;;  %v1119_v58 = vsel %vm51_vm1, %v1111_v35, 0.0  ;;  %v2021_v2 = vpop.permute.xlu1 %99 }
 0x230   :  { %2399 = vst [vmem:[#allocation27_spill] sm:$0xff] %v2003_v9  ;;  %2400 = vst [vmem:[#allocation28_spill] sm:$0xff] %v2006_v37  ;;  %v2012_v61 = vsel %vm1976_vm2, %v1090_v0, %v1781_v25  ;;  %v892_v17 = vrot.slane %v891_v19, 4  ;;  %v151_v3 = vsel %vm51_vm1, %v137_v13, 0.0  ;;  %v442_v47 = vsel %vm51_vm1, %v428_v7, 0.0 }
 0x231   :  { %2401 = vst [vmem:[#allocation29_spill] sm:$0xff] %v2012_v61  ;;  %v1210_v27 = vsel %vm51_vm1, %v2012_v61, -inf  ;;  %v670_v38 = vsel %vm51_vm1, %v656_v53, 0.0  ;;  %v898_v31 = vsel %vm51_vm1, %v884_v8, 0.0  ;;  %v1126_v51 = vsel %vm51_vm1, %v1112_v44, 0.0 }
 0x232   :  { %v1211_v35 = vrot.slane %v1210_v27, 4  ;;  %v138_v25 = vmul.f32 %v1776_v24, %v2021_v2  ;;  %v429_v11 = vmul.f32 %v1793_v63, %v2021_v2  ;;  %v657_v21 = vmul.f32 %v1796_v33, %v2021_v2 }
 0x233   :  { %v1120_v28 = vrot.slane %v1119_v58, 4  ;;  %v152_v40 = vrot.slane %v151_v3, 4  ;;  %v443_v5 = vrot.slane %v442_v47, 4  ;;  %v665_v41 = vadd.f32 %v664_v10, %v663_v59 }
 0x234   :  { %v1212_v7 = vmax.f32 %v1210_v27, %v1211_v35  ;;  %v671_v53 = vrot.slane %v670_v38, 4  ;;  %v899_v8 = vrot.slane %v898_v31, 4  ;;  %v147_v44 = vrot.slane %v146_v23, 2 }
 0x235   :  { %v438_v0 = vrot.slane %v437_v57, 2  ;;  %v893_v20 = vadd.f32 %v892_v17, %v891_v19  ;;  %v1127_v42 = vrot.slane %v1126_v51, 4  ;;  %v158_v39 = vsel %vm51_vm1, %v138_v25, 0.0 }
 0x236   :  { %v1213_v55 = vrot.slane %v1212_v7, 2  ;;  %v449_v32 = vsel %vm51_vm1, %v429_v11, 0.0  ;;  %v677_v46 = vsel %vm51_vm1, %v657_v21, 0.0  ;;  %v1121_v43 = vadd.f32 %v1120_v28, %v1119_v58 }
 0x237   :  { %v153_v45 = vadd.f32 %v152_v40, %v151_v3  ;;  %v444_v18 = vadd.f32 %v443_v5, %v442_v47  ;;  %v2034_v13 = vadd.f32 %v1169_v56, %v1966_v62  ;;  %v666_v10 = vrot.slane %v665_v41, 2 }
 0x238   :  { %v1214_v59 = vmax.f32 %v1212_v7, %v1213_v55  ;;  %v672_v27 = vadd.f32 %v671_v53, %v670_v38  ;;  %v900_v35 = vadd.f32 %v899_v8, %v898_v31  ;;  %v1128_v22 = vadd.f32 %v1127_v42, %v1126_v51 }
 0x239   :  { %2402 = vst [vmem:[#allocation30_spill] sm:$0xff] %v2034_v13  ;;  %v159_v19 = vrot.slane %v158_v39, 4  ;;  %v450_v17 = vrot.slane %v449_v32, 4  ;;  %v678_v30 = vrot.slane %v677_v46, 4  ;;  %v148_v25 = vadd.f32 %v147_v44, %v146_v23 }
 0x23a   :  { %v1215_v9 = vrot.slane %v1214_v59, 1  ;;  %v439_v26 = vadd.f32 %v438_v0, %v437_v57  ;;  %v894_v11 = vrot.slane %v893_v20, 2  ;;  %v1122_v36 = vrot.slane %v1121_v43, 2 }
 0x23b   :  { %v154_v21 = vrot.slane %v153_v45, 2  ;;  %v445_v58 = vrot.slane %v444_v18, 2  ;;  %v885_v3 = vmul.f32 %v1799_v34, %v2021_v2  ;;  %v667_v56 = vadd.f32 %v666_v10, %v665_v41 }
 0x23c   :  { %v2038_v62 = vmax.f32 %v1214_v59, %v1215_v9  ;;  %v673_v55 = vrot.slane %v672_v27, 2  ;;  %v901_v47 = vrot.slane %v900_v35, 2  ;;  %v1129_v38 = vrot.slane %v1128_v22, 2  ;;  %v2043_v9 = vpop.permute.xlu1 %113 }
 0x23d   :  { %v160_v42 = vadd.f32 %v159_v19, %v158_v39  ;;  %v451_v31 = vadd.f32 %v450_v17, %v449_v32  ;;  %v679_v51 = vadd.f32 %v678_v30, %v677_v46  ;;  %v149_v57 = vrot.slane %v148_v25, 1 }
 0x23e   :  { %2403 = vst [vmem:[#allocation31_spill] sm:$0xff] %v2038_v62  ;;  %v1217_v23 = vsub.f32 %v2012_v61, %v2038_v62  ;;  %v440_v28 = vrot.slane %v439_v26, 1  ;;  %v895_v40 = vadd.f32 %v894_v11, %v893_v20  ;;  %v1123_v5 = vadd.f32 %v1122_v36, %v1121_v43 }
 0x23f   :  { %v155_v7 = vadd.f32 %v154_v21, %v153_v45  ;;  %v446_v53 = vadd.f32 %v445_v58, %v444_v18  ;;  %v905_v8 = vsel %vm51_vm1, %v885_v3, 0.0  ;;  %v674_v44 = vadd.f32 %v673_v55, %v672_v27 }
 0x240   :  { %v1218_v41 = vmul.f32 1.442695, %v1217_v23  ;;  %v902_v0 = vadd.f32 %v901_v47, %v900_v35  ;;  %v140_v32 = vmul.f32 %v1776_v24, %v2043_v9  ;;  %v1130_v30 = vadd.f32 %v1129_v38, %v1128_v22 }
 0x241   :  { %v161_v46 = vrot.slane %v160_v42, 2  ;;  %v452_v39 = vrot.slane %v451_v31, 2  ;;  %v680_v59 = vrot.slane %v679_v51, 2  ;;  %v668_v10 = vrot.slane %v667_v56, 1 }
 0x242   :  { %1476 = vpow2.f32 %v1218_v41  ;;  %v896_v20 = vrot.slane %v895_v40, 1  ;;  %v906_v43 = vrot.slane %v905_v8, 4  ;;  %v150_v45 = vadd.f32 %v149_v57, %v148_v25 }
 0x243   :  { %v1124_v36 = vrot.slane %v1123_v5, 1  ;;  %v156_v18 = vrot.slane %v155_v7, 1  ;;  %v1113_v19 = vmul.f32 %v1807_v49, %v2021_v2  ;;  %v447_v17 = vrot.slane %v446_v53, 1 }
 0x244   :  { %v675_v27 = vrot.slane %v674_v44, 1  ;;  %v903_v35 = vrot.slane %v902_v0, 1  ;;  %v172_v11 = vsel %vm51_vm1, %v140_v32, 0.0  ;;  %v1131_v21 = vrot.slane %v1130_v30, 1  ;;  %v2053_v32 = vpop.permute.xlu1 %127 }
 0x245   :  { %v162_v22 = vadd.f32 %v161_v46, %v160_v42  ;;  %v453_v58 = vadd.f32 %v452_v39, %v451_v31  ;;  %v681_v3 = vadd.f32 %v680_v59, %v679_v51  ;;  %v441_v55 = vadd.f32 %v440_v28, %v439_v26 }
 0x246   :  { %v669_v47 = vadd.f32 %v668_v10, %v667_v56  ;;  %v897_v38 = vadd.f32 %v896_v20, %v895_v40  ;;  %v907_v23 = vadd.f32 %v906_v43, %v905_v8  ;;  %v1125_v41 = vadd.f32 %v1124_v36, %v1123_v5 }
 0x247   :  { %v1133_v25 = vsel %vm51_vm1, %v1113_v19, 0.0  ;;  %v173_v57 = vrot.slane %v172_v11, 4  ;;  %v431_v2 = vmul.f32 %v1793_v63, %v2043_v9  ;;  %v157_v61 = vadd.f32 %v156_v18, %v155_v7 }
 0x248   :  { %v448_v13 = vadd.f32 %v447_v17, %v446_v53  ;;  %v676_v12 = vadd.f32 %v675_v27, %v674_v44  ;;  %v904_v62 = vadd.f32 %v903_v35, %v902_v0  ;;  %v1132_v42 = vadd.f32 %v1131_v21, %v1130_v30 }
 0x249   :  { %v163_v31 = vrot.slane %v162_v22, 1  ;;  %v454_v51 = vrot.slane %v453_v58, 1  ;;  %v682_v26 = vrot.slane %v681_v3, 1  ;;  %v908_v56 = vrot.slane %v907_v23, 2 }
 0x24a   :  { %v1134_v28 = vrot.slane %v1133_v25, 4  ;;  %v659_v40 = vmul.f32 %v1796_v33, %v2043_v9  ;;  %v2404_v5 = vrot.slane %v1963_v29, 1  ;;  %v2062_v7 = vadd.f32 %v173_v57, %v172_v11 }
 0x24b   :  { %v2065_v53 = vsel %vm51_vm1, %v431_v2, 0.0  ;;  %v142_v44 = vmul.f32 %v1776_v24, %v2053_v32  ;;  %v2071_v30 = vsel %vm208_vm3, %v157_v61, %v150_v45  ;;  %v2074_v46 = vsel %vm208_vm3, %v448_v13, %v441_v55 }
 0x24c   :  { %v2060_v8 = vadd.f32 %v2404_v5, %v1963_v29  ;;  %v2077_v39 = vsel %vm208_vm3, %v676_v12, %v669_v47  ;;  %v2080_v29 = vsel %vm208_vm3, %v904_v62, %v897_v38  ;;  %v2083_v59 = vsel %vm208_vm3, %v1132_v42, %v1125_v41  ;;  %v2407_v47 = vld [vmem:[#allocation9_spill] sm:$0xff] }
 0x24d   :  { %v2085_v10 = vadd.f32 %v163_v31, %v162_v22  ;;  %v2087_v20 = vadd.f32 %v454_v51, %v453_v58  ;;  %v2089_v43 = vadd.f32 %v682_v26, %v681_v3  ;;  %v2091_v61 = vadd.f32 %v908_v56, %v907_v23  ;;  %v2406_v3 = vld [vmem:[#allocation8_spill] sm:$0xff] }
 0x24e   :  { %2405 = vst [vmem:[#allocation32_spill] sm:$0xff] %v2060_v8  ;;  %v2093_v45 = vadd.f32 %v1134_v28, %v1133_v25  ;;  %v464_v13 = vrot.slane %v2065_v53, 4  ;;  %v2097_v12 = vsel %vm51_vm1, %v659_v40, 0.0  ;;  %v2102_v18 = vmul.f32 %v1799_v34, %v2043_v9 }
 0x24f   :  { %v1477_v62 = vpop.eup %1476  ;;  %v2105_v19 = vsel %vm51_vm1, %v142_v44, 0.0  ;;  %v2109_v17 = vmul.f32 %v1793_v63, %v2053_v32 }
 0x250   :  { %v1220_v27 = vmul.f32 %v1477_v62, %v1610_v48  ;;  %v1221_v35 = vmul.f32 %v1477_v62, %v1613_v50  ;;  %v1222_v11 = vmul.f32 %v1477_v62, %v1618_v54  ;;  %v1223_v21 = vmul.f32 %v1477_v62, %v1622_v60 }
 0x251   :  { %v1224_v22 = vmul.f32 %v1477_v62, %v1626_v4  ;;  %v1225_v58 = vmul.f32 %v1477_v62, %v1630_v16  ;;  %v1226_v55 = vmul.f32 %v1477_v62, %v2406_v3  ;;  %v1227_v38 = vmul.f32 %v1477_v62, %v2407_v47 }
 0x252   :  { %v1228_v23 = vsel %vm51_vm1, %v1220_v27, 0.0  ;;  %v1235_v41 = vsel %vm51_vm1, %v1221_v35, 0.0  ;;  %v1242_v48 = vsel %vm51_vm1, %v1222_v11, 0.0  ;;  %v1249_v50 = vsel %vm51_vm1, %v1223_v21, 0.0 }
 0x253   :  { %v1229_v25 = vrot.slane %v1228_v23, 4  ;;  %v1236_v54 = vrot.slane %v1235_v41, 4  ;;  %v1243_v57 = vrot.slane %v1242_v48, 4  ;;  %v1250_v60 = vrot.slane %v1249_v50, 4 }
 0x254   :  { %v1256_v4 = vsel %vm51_vm1, %v1224_v22, 0.0  ;;  %v1263_v16 = vsel %vm51_vm1, %v1225_v58, 0.0  ;;  %v1270_v2 = vsel %vm51_vm1, %v1226_v55, 0.0  ;;  %v1277_v42 = vsel %vm51_vm1, %v1227_v38, 0.0 }
 0x255   :  { %v1230_v31 = vadd.f32 %v1229_v25, %v1228_v23  ;;  %v1237_v51 = vadd.f32 %v1236_v54, %v1235_v41  ;;  %v1244_v26 = vadd.f32 %v1243_v57, %v1242_v48  ;;  %v1251_v56 = vadd.f32 %v1250_v60, %v1249_v50 }
 0x256   :  { %v1257_v28 = vrot.slane %v1256_v4, 4  ;;  %v1264_v40 = vrot.slane %v1263_v16, 4  ;;  %v1271_v5 = vrot.slane %v1270_v2, 4  ;;  %v1278_v44 = vrot.slane %v1277_v42, 4 }
 0x257   :  { %v1231_v62 = vrot.slane %v1230_v31, 2  ;;  %v1238_v27 = vrot.slane %v1237_v51, 2  ;;  %v1245_v35 = vrot.slane %v1244_v26, 2  ;;  %v1252_v11 = vrot.slane %v1251_v56, 2 }
 0x258   :  { %v1258_v21 = vadd.f32 %v1257_v28, %v1256_v4  ;;  %v1265_v22 = vadd.f32 %v1264_v40, %v1263_v16  ;;  %v1272_v3 = vadd.f32 %v1271_v5, %v1270_v2  ;;  %v1279_v58 = vadd.f32 %v1278_v44, %v1277_v42 }
 0x259   :  { %v1232_v47 = vadd.f32 %v1231_v62, %v1230_v31  ;;  %v1239_v55 = vadd.f32 %v1238_v27, %v1237_v51  ;;  %v1246_v0 = vadd.f32 %v1245_v35, %v1244_v26  ;;  %v1253_v38 = vadd.f32 %v1252_v11, %v1251_v56 }
 0x25a   :  { %v1259_v23 = vrot.slane %v1258_v21, 2  ;;  %v1266_v41 = vrot.slane %v1265_v22, 2  ;;  %v1273_v48 = vrot.slane %v1272_v3, 2  ;;  %v1280_v50 = vrot.slane %v1279_v58, 2 }
 0x25b   :  { %v1233_v25 = vrot.slane %v1232_v47, 1  ;;  %v1240_v54 = vrot.slane %v1239_v55, 1  ;;  %v1247_v57 = vrot.slane %v1246_v0, 1  ;;  %v1254_v60 = vrot.slane %v1253_v38, 1 }
 0x25c   :  { %v1260_v36 = vadd.f32 %v1259_v23, %v1258_v21  ;;  %v1267_v24 = vadd.f32 %v1266_v41, %v1265_v22  ;;  %v1274_v8 = vadd.f32 %v1273_v48, %v1272_v3  ;;  %v1281_v37 = vadd.f32 %v1280_v50, %v1279_v58 }
 0x25d   :  { %v1234_v4 = vadd.f32 %v1233_v25, %v1232_v47  ;;  %v1241_v16 = vadd.f32 %v1240_v54, %v1239_v55  ;;  %v465_v2 = vadd.f32 %v464_v13, %v2065_v53  ;;  %v187_v42 = vrot.slane %v2105_v19, 4 }
 0x25e   :  { %v1248_v31 = vadd.f32 %v1247_v57, %v1246_v0  ;;  %v1261_v51 = vrot.slane %v1260_v36, 1  ;;  %v1268_v26 = vrot.slane %v1267_v24, 1  ;;  %v1275_v56 = vrot.slane %v1274_v8, 1 }
 0x25f   :  { %v1255_v28 = vadd.f32 %v1254_v60, %v1253_v38  ;;  %v1282_v40 = vrot.slane %v1281_v37, 1  ;;  %1478 = vlog2.f32 %v1234_v4  ;;  %v692_v5 = vrot.slane %v2097_v12, 4 }
 0x260   :  { %v1262_v44 = vadd.f32 %v1261_v51, %v1260_v36  ;;  %v919_v62 = vsel %vm51_vm1, %v2102_v18, 0.0  ;;  %v477_v27 = vsel %vm51_vm1, %v2109_v17, 0.0  ;;  %v661_v53 = vmul.f32 %v1796_v33, %v2053_v32 }
 0x261   :  { %v1269_v13 = vadd.f32 %v1268_v26, %v1267_v24  ;;  %1480 = vlog2.f32 %v1241_v16  ;;  %v2408_v0 = vrot.slane %v2062_v7, 2  ;;  %v1115_v11 = vmul.f32 %v1807_v49, %v2043_v9 }
 0x262   :  { %v1276_v21 = vadd.f32 %v1275_v56, %v1274_v8  ;;  %1482 = vlog2.f32 %v1248_v31  ;;  %v466_v36 = vrot.slane %v465_v2, 2  ;;  %v188_v18 = vadd.f32 %v187_v42, %v2105_v19 }
 0x263   :  { %v176_v35 = vadd.f32 %v2408_v0, %v2062_v7  ;;  %v1283_v22 = vadd.f32 %v1282_v40, %v1281_v37  ;;  %1484 = vlog2.f32 %v1255_v28  ;;  %v693_v17 = vadd.f32 %v692_v5, %v2097_v12 }
 0x264   :  { %v478_v3 = vrot.slane %v477_v27, 4  ;;  %1486 = vlog2.f32 %v1262_v44  ;;  %v1136_v24 = vrot.slane %v2093_v45, 2  ;;  %v920_v58 = vrot.slane %v919_v62, 4 }
 0x265   :  { %v705_v47 = vsel %vm51_vm1, %v661_v53, 0.0  ;;  %1488 = vlog2.f32 %v1269_v13  ;;  %v910_v7 = vrot.slane %v2091_v61, 1  ;;  %v1147_v9 = vsel %vm51_vm1, %v1115_v11, 0.0 }
 0x266   :  { %v889_v8 = vmul.f32 %v1799_v34, %v2053_v32  ;;  %1490 = vlog2.f32 %v1276_v21  ;;  %v177_v37 = vrot.slane %v176_v35, 1  ;;  %v467_v19 = vadd.f32 %v466_v36, %v465_v2 }
 0x267   :  { %v189_v55 = vrot.slane %v188_v18, 2  ;;  %1492 = vlog2.f32 %v1283_v22  ;;  %v694_v12 = vrot.slane %v693_v17, 2  ;;  %v479_v38 = vadd.f32 %v478_v3, %v477_v27 }
 0x268   :  { %v706_v23 = vrot.slane %v705_v47, 4  ;;  %v211_v41 = vsel %vm210_vm4, %v2085_v10, %v2071_v30  ;;  %v500_v48 = vsel %vm210_vm4, %v2087_v20, %v2074_v46  ;;  %v728_v50 = vsel %vm210_vm4, %v2089_v43, %v2077_v39  ;;  %v2409_v46 = vld [vmem:[#allocation16_spill] sm:$0xff] }
 0x269   :  { %v921_v25 = vadd.f32 %v920_v58, %v919_v62  ;;  %v2159_v54 = vadd.f32 %v1136_v24, %v2093_v45  ;;  %v1148_v57 = vrot.slane %v1147_v9, 4  ;;  %v933_v60 = vsel %vm51_vm1, %v889_v8, 0.0 }
 0x26a   :  { %v1117_v4 = vmul.f32 %v1807_v49, %v2053_v32  ;;  %v911_v30 = vadd.f32 %v910_v7, %v2091_v61  ;;  %v178_v10 = vadd.f32 %v177_v37, %v176_v35  ;;  %v468_v16 = vrot.slane %v467_v19, 1  ;;  %v2413_v37 = vld [vmem:[#allocation31_spill] sm:$0xff] }
 0x26b   :  { %v190_v2 = vadd.f32 %v189_v55, %v188_v18  ;;  %v213_v20 = vsel %vm212_vm5, %v2409_v46, %v211_v41  ;;  %v695_v42 = vadd.f32 %v694_v12, %v693_v17  ;;  %v480_v39 = vrot.slane %v479_v38, 2  ;;  %v2414_v46 = vld [vmem:[#allocation6_spill] sm:$0xff] }
 0x26c   :  { %v707_v43 = vadd.f32 %v706_v23, %v705_v47  ;;  %v1479_v31 = vpop.eup %1478  ;;  %v501_v45 = vsel %vm212_vm5, %v1919_v6, %v500_v48  ;;  %v729_v51 = vsel %vm212_vm5, %v1926_v52, %v728_v50  ;;  %v922_v26 = vrot.slane %v921_v25, 2 }
 0x26d   :  { %v934_v32 = vrot.slane %v933_v60, 4  ;;  %v1287_v56 = vmul.f32 0.6931472, %v1479_v31  ;;  %v1138_v61 = vrot.slane %v2159_v54, 1  ;;  %v1149_v28 = vadd.f32 %v1148_v57, %v1147_v9 }
 0x26e   :  { %v1161_v40 = vsel %vm51_vm1, %v1117_v4, 0.0  ;;  %v1481_v5 = vpop.eup %1480  ;;  %v2175_v44 = vsel %vm210_vm4, %v911_v30, %v2080_v29  ;;  %v215_v62 = vsel %vm214_vm6, %v178_v10, %v213_v20  ;;  %v469_v27 = vadd.f32 %v468_v16, %v467_v19  ;;  %v2181_v29 = vld [vmem:[%s2330_s0 + $0x28] sm:$0xff] }
 0x26f   :  { %v191_v6 = vrot.slane %v190_v2, 1  ;;  %v1483_v53 = vpop.eup %1482  ;;  %v1289_v13 = vmul.f32 0.6931472, %v1481_v5  ;;  %v696_v52 = vrot.slane %v695_v42, 1  ;;  %v481_v0 = vadd.f32 %v480_v39, %v479_v38 }
 0x270   :  { %v708_v35 = vrot.slane %v707_v43, 2  ;;  %v1485_v11 = vpop.eup %1484  ;;  %v1291_v21 = vmul.f32 0.6931472, %v1483_v53  ;;  %v923_v36 = vadd.f32 %v922_v26, %v921_v25  ;;  %v935_v18 = vadd.f32 %v934_v32, %v933_v60  ;;  %v2416_v53 = vld [vmem:[#allocation24_spill] sm:$0xff] }
 0x271   :  { %v1162_v22 = vrot.slane %v1161_v40, 4  ;;  %v1487_v17 = vpop.eup %1486  ;;  %v2410_v3 = vrot.slane %v1931_v1, %v1582_v15  ;;  %v1293_v58 = vmul.f32 0.6931472, %v1485_v11  ;;  %v1310_v47 = vsel %vm208_vm3, %v1289_v13, %v1287_v56  ;;  %v2419_v11 = vld [vmem:[#allocation29_spill] sm:$0xff] }
 0x272   :  { %v1150_v7 = vrot.slane %v1149_v28, 2  ;;  %v217_v9 = vsel %vm216_vm7, %v1952_v14, %v215_v62  ;;  %v1489_v8 = vpop.eup %1488  ;;  %v1284_v19 = vadd.f32 %v2181_v29, %v2413_v37  ;;  %v1295_v55 = vmul.f32 0.6931472, %v1487_v17 }
 0x273   :  { %vm2186_vm11 = vcmp.eq.s32.totalorder %v2410_v3, 1  ;;  %v1311_v12 = vsel %vm210_vm4, %v1291_v21, %v1310_v47  ;;  %v192_v38 = vadd.f32 %v191_v6, %v190_v2  ;;  %v1491_v15 = vpop.eup %1490  ;;  %v1297_v1 = vmul.f32 0.6931472, %v1489_v8  ;;  %v2422_v3 = vld [vmem:[#allocation18_spill] sm:$0xff] }
 0x274   :  { %v1312_v23 = vsel %vm212_vm5, %v1293_v58, %v1311_v12  ;;  %v482_v41 = vrot.slane %v481_v0, 1  ;;  %v709_v48 = vadd.f32 %v708_v35, %v707_v43  ;;  %v1493_v50 = vpop.eup %1492  ;;  %v1299_v25 = vmul.f32 0.6931472, %v1491_v15  ;;  %v2424_v12 = vld [vmem:[#allocation28_spill] sm:$0xff] }
 0x275   :  { %v1313_v57 = vsel %vm214_vm6, %v1295_v55, %v1312_v23  ;;  %v936_v60 = vrot.slane %v935_v18, 2  ;;  %v1163_v14 = vadd.f32 %v1162_v22, %v1161_v40  ;;  %v1301_v4 = vmul.f32 0.6931472, %v1493_v50  ;;  %v2421_v22 = vld [vmem:[#allocation17_spill] sm:$0xff] }
 0x276   :  { %v1314_v30 = vsel %vm216_vm7, %v1297_v1, %v1313_v57  ;;  %v502_v10 = vsel %vm214_vm6, %v469_v27, %v501_v45  ;;  %v697_v16 = vadd.f32 %v696_v52, %v695_v42  ;;  %v1285_v2 = vadd.f32 %v1284_v19, %v2414_v46  ;;  %v2415_v42 = vld [vmem:[#allocation21_spill] sm:$0xff]  ;;  %v2418_v52 = vld [vmem:[#allocation30_spill] sm:$0xff]  ;;  %v2427_v57 = vld [vmem:[#allocation32_spill] sm:$0xff] }
 0x277   :  { %v1315_v20 = vsel %vm218_vm8, %v1299_v25, %v1314_v30  ;;  %v924_v39 = vrot.slane %v923_v36, 1  ;;  %v1151_v31 = vadd.f32 %v1150_v7, %v1149_v28  ;;  %v1139_v26 = vadd.f32 %v1138_v61, %v2159_v54  ;;  %v2428_v30 = vld [vmem:[#allocation7_spill] sm:$0xff] }
 0x278   :  { %v1316_v43 = vsel %vm220_vm9, %v1301_v4, %v1315_v20  ;;  %v219_v32 = vsel %vm218_vm8, %v192_v38, %v217_v9  ;;  %v710_v56 = vrot.slane %v709_v48, 1  ;;  %v483_v5 = vadd.f32 %v482_v41, %v481_v0  ;;  %v2420_v0 = vld [vmem:[#allocation27_spill] sm:$0xff]  ;;  %v2423_v9 = vld [vmem:[#allocation22_spill] sm:$0xff] }
 0x279   :  { %v1318_v40 = vadd.f32 %v1316_v43, %v1285_v2  ;;  %v937_v62 = vadd.f32 %v936_v60, %v935_v18  ;;  %v1164_v6 = vrot.slane %v1163_v14, 2  ;;  %v730_v45 = vsel %vm214_vm6, %v697_v16, %v729_v51  ;;  %v2430_v43 = vld [vmem:[#allocation19_spill] sm:$0xff] }
 0x27a   :  { %v503_v27 = vsel %vm216_vm7, %v2415_v42, %v502_v10  ;;  %v2417_v13 = vrot.slane %v2416_v53, 2  ;;  %v1171_v35 = vrot.slane %v2418_v52, 2  ;;  %v925_v61 = vadd.f32 %v924_v39, %v923_v36  ;;  %v2429_v10 = vld [vmem:[#allocation13_spill] sm:$0xff]  ;;  %v1499_v39 = vld [vmem:[%s2330_s0 + $0x18] sm:$0xff] }
 0x27b   :  { %v1326_v54 = vsel %vm2186_vm11, %v1318_v40, %v2419_v11  ;;  %v1152_v21 = vrot.slane %v1151_v31, 1  ;;  %v221_v18 = vsel %vm220_vm9, %v2420_v0, %v219_v32  ;;  %v1184_v17 = vsel %vm210_vm4, %v1139_v26, %v2083_v59 }
 0x27c   :  { %v944_v28 = vadd.f32 %v2417_v13, %v2416_v53  ;;  %v2218_v51 = vadd.f32 %v2421_v22, %v1326_v54  ;;  %v957_v58 = vsel %vm212_vm5, %v2422_v3, %v2175_v44  ;;  %v711_v47 = vadd.f32 %v710_v56, %v709_v48  ;;  %v2426_v48 = vld [vmem:[#allocation20_spill] sm:$0xff]  ;;  %v2432_v56 = vld [vmem:[#allocation23_spill] sm:$0xff]  ;;  %v1395_v13 = vld [vmem:[%s2331_s1 + $0x5] ss:$0 sm:$0xff] }
 0x27d   :  { %v504_v7 = vsel %vm218_vm8, %v483_v5, %v503_v27  ;;  %v731_v36 = vsel %vm216_vm7, %v2423_v9, %v730_v45  ;;  %v938_v8 = vrot.slane %v937_v62, 1  ;;  %v1165_v37 = vadd.f32 %v1164_v6, %v1163_v14  ;;  %v1498_v14 = vld [vmem:[%s2330_s0 + $0x10] sm:$0xff]  ;;  %v2436_v9 = vld [vmem:[#allocation5_spill] sm:$0xff] }
 0x27e   :  { %v1343_v19 = vsel %vm51_vm1, %v2218_v51, -inf  ;;  %v223_v55 = vmul.f32 %v1793_v63, %v221_v18  ;;  %v2425_v59 = vrot.slane %v2424_v12, 1  ;;  %v945_v15 = vrot.slane %v944_v28, 1  ;;  %v2433_v27 = vld [vmem:[#allocation15_spill] sm:$0xff]  ;;  %v2434_v18 = vld [vmem:[#allocation14_spill] sm:$0xff] }
 0x27f   :  { %v1344_v1 = vrot.slane %v1343_v19, 4  ;;  %v958_v44 = vsel %vm214_vm6, %v925_v61, %v957_v58  ;;  %v1153_v23 = vadd.f32 %v1152_v21, %v1151_v31  ;;  %v1172_v41 = vadd.f32 %v1171_v35, %v2418_v52 }
 0x280   :  { %v718_v38 = vadd.f32 %v2425_v59, %v2424_v12  ;;  %v1185_v50 = vsel %vm212_vm5, %v2426_v48, %v1184_v17  ;;  %v732_v25 = vsel %vm218_vm8, %v711_v47, %v731_v36  ;;  %v505_v60 = vsel %vm220_vm9, %v2427_v57, %v504_v7 }
 0x281   :  { %v515_v4 = vmul.f32 %v1498_v14, %v1796_v33  ;;  %v50_v16 = vmul.f32 %v2429_v10, %v2428_v30  ;;  %v1345_v46 = vmax.f32 %v1343_v19, %v1344_v1  ;;  %v939_v2 = vadd.f32 %v938_v8, %v937_v62  ;;  %v2437_v19 = vld [vmem:[#allocation25_spill] sm:$0xff] }
 0x282   :  { %v1166_v20 = vrot.slane %v1165_v37, 1  ;;  %v743_v31 = vmul.f32 %v1499_v39, %v1799_v34  ;;  %v2431_v26 = vrot.slane %v2430_v43, 1  ;;  %v959_v40 = vsel %vm216_vm7, %v2432_v56, %v958_v44 }
 0x283   :  { %v224_v5 = vsel %vm51_vm1, %v223_v55, 0.0  ;;  %v1346_v6 = vrot.slane %v1345_v46, 2  ;;  %v1186_v45 = vsel %vm214_vm6, %v1153_v23, %v1185_v50  ;;  %v507_v62 = vmul.f32 %v1796_v33, %v505_v60 }
 0x284   :  { %v1160_v32 = vadd.f32 %v2431_v26, %v2430_v43  ;;  %v733_v42 = vsel %vm220_vm9, %v718_v38, %v732_v25  ;;  %v61_v53 = vrot.slane %v2433_v27, 4  ;;  %v946_v52 = vadd.f32 %v945_v15, %v944_v28 }
 0x285   :  { %v1173_v35 = vrot.slane %v1172_v41, 1  ;;  %v516_v11 = vsel %vm51_vm1, %v515_v4, 0.0  ;;  %v1347_v54 = vmax.f32 %v1345_v46, %v1346_v6  ;;  %v960_v61 = vsel %vm218_vm8, %v939_v2, %v959_v40 }
 0x286   :  { %v1167_v21 = vadd.f32 %v1166_v20, %v1165_v37  ;;  %v225_v0 = vrot.slane %v224_v5, 4  ;;  %v2435_v17 = vrot.slane %v2434_v18, 4  ;;  %v52_v58 = vsel %vm51_vm1, %v50_v16, 0.0 }
 0x287   :  { %v1187_v47 = vsel %vm216_vm7, %v1160_v32, %v1186_v45  ;;  %v735_v7 = vmul.f32 %v1799_v34, %v733_v42  ;;  %v744_v28 = vsel %vm51_vm1, %v743_v31, 0.0  ;;  %vm1108_vm3 = vcmp.eq.s32.totalorder %v1395_v13, %v2436_v9 }
 0x288   :  { %v234_v3 = vadd.f32 %v2435_v17, %v2434_v18  ;;  %v1348_v36 = vrot.slane %v1347_v54, 1  ;;  %v508_v8 = vsel %vm51_vm1, %v507_v62, 0.0  ;;  %v971_v37 = vmul.f32 %v1807_v49, %v2437_v19 }
 0x289   :  { %v961_v55 = vsel %vm220_vm9, %v946_v52, %v960_v61  ;;  %v1174_v12 = vadd.f32 %v1173_v35, %v1172_v41  ;;  %v517_v59 = vrot.slane %v516_v11, 4  ;;  %v415_v15 = vsel %vm1661_vm10, %v1793_v63, %v2429_v10 }
 0x28a   :  { %v2282_v1 = vmax.f32 %v1347_v54, %v1348_v36  ;;  %v1188_v44 = vsel %vm218_vm8, %v1167_v21, %v1187_v47  ;;  %v226_v23 = vadd.f32 %v225_v0, %v224_v5  ;;  %v235_v48 = vrot.slane %v234_v3, 2  ;;  %v1501_v54 = vld [vmem:[%s2332_s2 + $0x2] sm:$0x1] }
 0x28b   :  { %v2439_v50 = vmov 0.0   ;;  %v509_v57 = vrot.slane %v508_v8, 4  ;;  %v736_v60 = vsel %vm51_vm1, %v735_v7, 0.0  ;;  %v53_v14 = vrot.slane %v52_v58, 4 }
 0x28c   :  { %v1396_v25 = vsel %vm1108_vm3, 1.0, %v2439_v50  ;;  %v745_v4 = vrot.slane %v744_v28, 4  ;;  %v1350_v41 = vsub.f32 %v2218_v51, %v2282_v1  ;;  %v963_v30 = vmul.f32 %v1807_v49, %v961_v55 }
 0x28d   :  { %v643_v10 = vsel %vm1710_vm12, %v1796_v33, %v415_v15  ;;  %v972_v16 = vsel %vm51_vm1, %v971_v37, 0.0  ;;  %v1189_v46 = vsel %vm220_vm9, %v1174_v12, %v1188_v44  ;;  %v518_v2 = vadd.f32 %v517_v59, %v516_v11 }
 0x28e   :  { %v1199_v20 = vmul.f32 %v1396_v25, %v2181_v29  ;;  %v1351_v39 = vmul.f32 1.442695, %v1350_v41  ;;  %v227_v31 = vrot.slane %v226_v23, 2  ;;  %v737_v43 = vrot.slane %v736_v60, 4 }
 0x28f   :  { %v62_v26 = vadd.f32 %v61_v53, %v2433_v27  ;;  %v510_v32 = vadd.f32 %v509_v57, %v508_v8  ;;  %v54_v51 = vadd.f32 %v53_v14, %v52_v58  ;;  %v964_v56 = vsel %vm51_vm1, %v963_v30, 0.0 }
 0x290   :  { %1494 = vpow2.f32 %v1351_v39  ;;  %v1191_v40 = vmul.f32 %v1396_v25, %v1189_v46  ;;  %v746_v5 = vadd.f32 %v745_v4, %v744_v28  ;;  %v871_v6 = vsel %vm1771_vm15, %v1799_v34, %v643_v10 }
 0x291   :  { %v973_v45 = vrot.slane %v972_v16, 4  ;;  %v519_v62 = vrot.slane %v518_v2, 2  ;;  %v236_v42 = vadd.f32 %v235_v48, %v234_v3  ;;  %v1200_v29 = vsel %vm51_vm1, %v1199_v20, 0.0 }
 0x292   :  { %v228_v13 = vadd.f32 %v227_v31, %v226_v23  ;;  %v738_v52 = vadd.f32 %v737_v43, %v736_v60  ;;  %v511_v35 = vrot.slane %v510_v32, 2  ;;  %v965_v27 = vrot.slane %v964_v56, 4 }
 0x293   :  { %v63_v53 = vrot.slane %v62_v26, 2  ;;  %v55_v11 = vrot.slane %v54_v51, 2  ;;  %v1099_v61 = vsel %vm1976_vm2, %v1807_v49, %v871_v6  ;;  %v1192_v21 = vsel %vm51_vm1, %v1191_v40, 0.0 }
 0x294   :  { %v974_v0 = vadd.f32 %v973_v45, %v972_v16  ;;  %v1201_v18 = vrot.slane %v1200_v29, 4  ;;  %v520_v34 = vadd.f32 %v519_v62, %v518_v2  ;;  %v747_v17 = vrot.slane %v746_v5, 2 }
 0x295   :  { %v237_v58 = vrot.slane %v236_v42, 1  ;;  %v229_v3 = vrot.slane %v228_v13, 1  ;;  %v739_v47 = vrot.slane %v738_v52, 2  ;;  %v1327_v7 = vsel %vm2186_vm11, %v1396_v25, %v1099_v61 }
 0x296   :  { %v512_v28 = vadd.f32 %v511_v35, %v510_v32  ;;  %v966_v9 = vadd.f32 %v965_v27, %v964_v56  ;;  %v1193_v36 = vrot.slane %v1192_v21, 4  ;;  %v64_v8 = vadd.f32 %v63_v53, %v62_v26  ;;  %v1500_v56 = vld [vmem:[%s2332_s2 + $0x1] sm:$0x1] }
 0x297   :  { %v56_v19 = vadd.f32 %v55_v11, %v54_v51  ;;  %v1202_v37 = vadd.f32 %v1201_v18, %v1200_v29  ;;  %v521_v55 = vrot.slane %v520_v34, 1  ;;  %v748_v49 = vadd.f32 %v747_v17, %v746_v5 }
 0x298   :  { %v975_v12 = vrot.slane %v974_v0, 2  ;;  %v238_v59 = vadd.f32 %v237_v58, %v236_v42  ;;  %v1333_v38 = vmul.f32 %v2421_v22, %v1327_v7  ;;  %v230_v15 = vadd.f32 %v229_v3, %v228_v13  ;;  %v1502_v58 = vld [vmem:[%s2332_s2 + $0x3] sm:$0x1] }
 0x299   :  { %v740_v44 = vadd.f32 %v739_v47, %v738_v52  ;;  %v513_v23 = vrot.slane %v512_v28, 1  ;;  %v967_v48 = vrot.slane %v966_v9, 2  ;;  %v1194_v50 = vadd.f32 %v1193_v36, %v1192_v21 }
 0x29a   :  { %v65_v57 = vrot.slane %v64_v8, 1  ;;  %v57_v24 = vrot.slane %v56_v19, 1  ;;  %v1203_v60 = vrot.slane %v1202_v37, 2  ;;  %v522_v14 = vadd.f32 %v521_v55, %v520_v34 }
 0x29b   :  { %v749_v4 = vrot.slane %v748_v49, 1  ;;  %v976_v41 = vadd.f32 %v975_v12, %v974_v0  ;;  %v1334_v30 = vsel %vm51_vm1, %v1333_v38, 0.0  ;;  %v239_v63 = vadd.f32 %v238_v59, %v230_v15  ;;  %v1504_v59 = vld [vmem:[%s2332_s2 + $0x5] sm:$0x1] }
 0x29c   :  { %v741_v10 = vrot.slane %v740_v44, 1  ;;  %v514_v46 = vadd.f32 %v513_v23, %v512_v28  ;;  %v968_v22 = vadd.f32 %v967_v48, %v966_v9  ;;  %v1195_v2 = vrot.slane %v1194_v50, 2 }
 0x29d   :  { %v1495_v25 = vpop.eup %1494  ;;  %v66_v39 = vadd.f32 %v65_v57, %v64_v8  ;;  %v58_v31 = vadd.f32 %v57_v24, %v56_v19  ;;  %v1204_v43 = vadd.f32 %v1203_v60, %v1202_v37  ;;  %v750_v26 = vadd.f32 %v749_v4, %v748_v49  ;;  %v1503_v19 = vld [vmem:[%s2332_s2 + $0x4] sm:$0x1] }
 0x29e   :  { %v1353_v16 = vsel %vm51_vm1, %v1495_v25, 0.0  ;;  %v1335_v51 = vrot.slane %v1334_v30, 4  ;;  %v240_v40 = vmul.f32 %v1500_v56, %v239_v63  ;;  %v742_v5 = vadd.f32 %v741_v10, %v740_v44 }
 0x29f   :  { %v1354_v20 = vrot.slane %v1353_v16, 4  ;;  %v977_v33 = vrot.slane %v976_v41, 1  ;;  %v523_v6 = vadd.f32 %v522_v14, %v514_v46  ;;  %v969_v45 = vrot.slane %v968_v22, 1 }
 0x2a0   :  { %v1196_v62 = vadd.f32 %v1195_v2, %v1194_v50  ;;  %v67_v29 = vadd.f32 %v66_v39, %v58_v31  ;;  %v1205_v13 = vrot.slane %v1204_v43, 1  ;;  %v1336_v35 = vadd.f32 %v1335_v51, %v1334_v30 }
 0x2a1   :  { %v1355_v32 = vadd.f32 %v1354_v20, %v1353_v16  ;;  %v751_v53 = vadd.f32 %v750_v26, %v742_v5  ;;  %v978_v11 = vadd.f32 %v977_v33, %v976_v41  ;;  %v524_v61 = vmul.f32 %v1501_v54, %v523_v6 }
 0x2a2   :  { %v241_v27 = vadd.f32 %v240_v40, %v67_v29  ;;  %v970_v21 = vadd.f32 %v969_v45, %v968_v22  ;;  %v1197_v0 = vrot.slane %v1196_v62, 1  ;;  %v1337_v17 = vrot.slane %v1336_v35, 2 }
 0x2a3   :  { %v1356_v42 = vrot.slane %v1355_v32, 2  ;;  %v752_v3 = vmul.f32 %v1502_v58, %v751_v53  ;;  %v1206_v47 = vadd.f32 %v1205_v13, %v1204_v43  ;;  %vm1364_vm1 = vcmask 24576  }
 0x2a4   :  { %v525_v7 = vadd.f32 %v524_v61, %v241_v27  ;;  %v979_v28 = vadd.f32 %v978_v11, %v970_v21  ;;  %v1198_v9 = vadd.f32 %v1197_v0, %v1196_v62  ;;  %v1338_v36 = vadd.f32 %v1337_v17, %v1336_v35 }
 0x2a5   :  { %v1357_v52 = vadd.f32 %v1356_v42, %v1355_v32 }
 0x2a6   :  { %v753_v8 = vadd.f32 %v752_v3, %v525_v7  ;;  %v980_v37 = vmul.f32 %v1503_v19, %v979_v28  ;;  %v1207_v55 = vadd.f32 %v1206_v47, %v1198_v9  ;;  %v1339_v49 = vrot.slane %v1338_v36, 1 }
 0x2a7   :  { %v1358_v18 = vrot.slane %v1357_v52, 1 }
 0x2a8   :  { %v981_v12 = vadd.f32 %v980_v37, %v753_v8  ;;  %v1208_v38 = vmul.f32 %v1504_v59, %v1207_v55  ;;  %v1340_v44 = vadd.f32 %v1339_v49, %v1338_v36 }
 0x2a9   :  { %v1359_v34 = vadd.f32 %v1358_v18, %v1357_v52 }
 0x2aa   :  { %v1209_v15 = vadd.f32 %v1208_v38, %v981_v12 }
 0x2ab   :  { %1496 = vlog2.f32 %v1359_v34 }
 0x2ac   :  { %v1341_v50 = vadd.f32 %v1340_v44, %v1209_v15 }
 0x2b8   :  { %v1497_v23 = vpop.eup %1496 }
 0x2b9   :  { %v1361_v48 = vmul.f32 0.6931472, %v1497_v23 }
 0x2bb   :  { %v1362_v57 = vadd.f32 %v1361_v48, %v2282_v1 }
 0x2bd   :  { %v1363_v24 = vsub.f32 %v1341_v50, %v1362_v57 }
 0x2bf   :  { %1365 = vst.msk [vmem:[#allocation2] sm:$0x1] %vm1364_vm1, %v1363_v24 }
 0x2c0   :  { %1516 = shalt.err (!%p1513_p4)
}
 0x2c1   :  { %1375 = dma.vmem_to_hbm [thread:$0]  %s1373_s20, 16, %s2336_s6, [#allocation3]  }
 0x2c2   :  { %1525 = dma.done.wait [#allocation3], 16  }
 0x2c3   :  { %1526 = vsyncadd [#allocation3], 4294967280 }
 0x2c4   :  { %1379 = vsyncpa [#allocation3], 1 }

</bundles_post_ra>
